<compile_context>
chip_gen: v7x
topology: tpu7x:2x2x1
jax: 0.10.0
libtpu: 0.0.40
codegen_flags: <defaults>
</compile_context>

<pallas_src>
from functools import partial

import jax
import jax.numpy as jnp
from jax.experimental import pallas as pl
from jax.experimental.pallas import tpu as pltpu


def inverted_residual_kernel(xt_ref, w1_ref, wdw_ref, mask_ref, w3_ref, bias_ref,
                             out_ref, hpad_ref,
                             *, W, pad, has_expansion, use_residual):
    """Whole-block inverted-residual forward.

    xt_ref   : (C_in, N)            input, channels x flattened (b, y, x)
    w1_ref   : (hidden, C_in)       expansion 1x1 weight (BN1 scale folded)
    wdw_ref  : (hidden, 9)          depthwise 3x3 taps   (BN2 scale folded)
    mask_ref : (9, N)               spatial border masks per tap (f32 0/1)
    w3_ref   : (C_out, hidden)      reduction 1x1 weight (BN3 scale folded)
    bias_ref : (2*hidden+C_out, 1)  packed [b1 | b2 | b3] bias column
    out_ref  : (C_out, N)
    hpad_ref : (hidden, N + 2*pad)  zero-padded flat buffer for the 3x3 taps
    """
    c_in, N = xt_ref.shape
    hidden = wdw_ref.shape[0]
    c_out = out_ref.shape[0]

    def silu(v):  # x * sigmoid(x), exp/div only (safe Mosaic lowering)
        return v / (1.0 + jnp.exp(-v))

    xt = xt_ref[...].astype(jnp.float32)                     # (C_in, N) lane-dense

    bias = bias_ref[...]                                     # (2*hidden+C_out, 1)
    b2 = bias[hidden:2 * hidden, :]
    b3 = bias[2 * hidden:2 * hidden + c_out, :]

    # -------- expansion 1x1 (+ folded BN1, SiLU) as one MXU matmul --------
    if has_expansion:
        b1 = bias[0:hidden, :]
        h = jnp.dot(w1_ref[...], xt,
                    preferred_element_type=jnp.float32) + b1  # (hidden, N)
        h = silu(h)
    else:
        h = xt                                                # hidden == C_in

    # -------- depthwise 3x3 (+ folded BN2, SiLU) --------
    # Zero-padded flat buffer: every 3x3 tap becomes a static lane-sliced read,
    # out-of-image taps are killed by the precomputed border masks.
    hpad_ref[...] = jnp.zeros_like(hpad_ref)
    hpad_ref[:, pad:pad + N] = h

    wdw = wdw_ref[...]                                        # (hidden, 9)
    masks = mask_ref[...]                                     # (9, N)

    acc = jnp.zeros((hidden, N), jnp.float32)
    t = 0
    for dy in (-1, 0, 1):
        for dx in (-1, 0, 1):
            shift = dy * W + dx
            tap = hpad_ref[:, pad + shift:pad + shift + N]    # (hidden, N)
            acc = acc + tap * masks[t:t + 1, :] * wdw[:, t:t + 1]
            t += 1
    acc = silu(acc + b2)

    # -------- reduction 1x1 (+ folded BN3, no activation) as one MXU matmul --------
    y = jnp.dot(w3_ref[...], acc,
                preferred_element_type=jnp.float32) + b3      # (C_out, N)
    if use_residual:
        y = y + xt
    out_ref[...] = y.astype(out_ref.dtype)                    # lane-dense store


def inverted_residual_forward(x, params, *, stride, expand_ratio, eps=1e-5):
    """x: (B, C_in, H, W) NCHW, PyTorch-style params. Eval-mode forward."""
    assert stride in (1, 2)
    B, C_in, H, W = x.shape
    hidden = int(round(C_in * expand_ratio))
    C_out = params["w_red"].shape[0]
    has_expansion = expand_ratio != 1
    use_residual = (stride == 1) and (C_in == C_out)
    N = B * H * W
    PAD = max(W + 1, 128)   # lane-aligned interior offset when W is small

    def bn_fold(bn):
        gamma, beta, mean, var = bn
        s = gamma / jnp.sqrt(var + eps)
        return s, beta - mean * s

    # ---- fold eval-mode BatchNorm into the conv weights / biases (trace time) ----
    if has_expansion:
        s1, t1 = bn_fold(params["bn1"])
        w1 = params["w_exp"] * s1[:, None]                       # (hidden, C_in)
        b1 = t1
    else:
        w1 = jnp.zeros((hidden, C_in), jnp.float32)              # unused
        b1 = jnp.zeros((hidden,), jnp.float32)

    s2, t2 = bn_fold(params["bn2"])
    wdw = (params["w_dw"] * s2[:, None, None]).reshape(hidden, 9)  # (hidden, 9)
    b2 = t2

    s3, t3 = bn_fold(params["bn3"])
    w3 = params["w_red"] * s3[:, None]                           # (C_out, hidden)
    b3 = t3

    # pack the three tiny bias vectors -> one DMA (sublane column layout)
    bias_pack = jnp.concatenate([b1, b2, b3]).reshape(2 * hidden + C_out, 1)

    # static 3x3 border masks over the flattened (b, y, x) lane axis
    oy = jnp.arange(H).reshape(H, 1)
    ox = jnp.arange(W).reshape(1, W)
    rows = []
    for dy in (-1, 0, 1):
        for dx in (-1, 0, 1):
            valid = ((oy + dy >= 0) & (oy + dy < H) &
                     (ox + dx >= 0) & (ox + dx < W)).astype(jnp.float32)
            rows.append(jnp.tile(valid.reshape(1, H * W), (1, B)))
    tap_masks = jnp.concatenate(rows, axis=0)                    # (9, N)

    # channels-in-sublanes / flattened-spatial-in-lanes activation layout
    xt = jnp.transpose(x, (1, 0, 2, 3)).reshape(C_in, N)

    kernel = partial(inverted_residual_kernel, W=W, pad=PAD,
                     has_expansion=has_expansion, use_residual=use_residual)

    y = pl.pallas_call(
        kernel,
        out_shape=jax.ShapeDtypeStruct((C_out, N), x.dtype),
        grid_spec=pltpu.PrefetchScalarGridSpec(
            num_scalar_prefetch=0,
            grid=(1,),  # single invocation: whole (tiny) problem is VMEM-resident
            in_specs=[
                pl.BlockSpec((C_in, N), lambda i: (0, 0)),
                pl.BlockSpec((hidden, C_in), lambda i: (0, 0)),
                pl.BlockSpec((hidden, 9), lambda i: (0, 0)),
                pl.BlockSpec((9, N), lambda i: (0, 0)),
                pl.BlockSpec((C_out, hidden), lambda i: (0, 0)),
                pl.BlockSpec((2 * hidden + C_out, 1), lambda i: (0, 0)),
            ],
            out_specs=pl.BlockSpec((C_out, N), lambda i: (0, 0)),
            scratch_shapes=[pltpu.VMEM((hidden, N + 2 * PAD), jnp.float32)]),
        compiler_params=pltpu.CompilerParams(
            dimension_semantics=("arbitrary",)),
    )(xt, w1, wdw, tap_masks, w3, bias_pack)

    out = jnp.transpose(y.reshape(C_out, B, H, W), (1, 0, 2, 3))  # NCHW (stride-1 grid)
    if stride == 2:
        # reduction 1x1 / BN3 are pointwise per spatial position, so computing
        # them at stride 1 and subsampling afterwards is exactly equivalent.
        out = out[:, :, ::2, ::2]
    return out


def reference_forward(x, params, *, stride, expand_ratio, eps=1e-5):
    """Pure-JAX reference mirroring the PyTorch forward (eval mode)."""
    B, C_in, H, W = x.shape
    hidden = int(round(C_in * expand_ratio))
    C_out = params["w_red"].shape[0]
    hp = jax.lax.Precision.HIGHEST

    def bn(v, stats):
        g, b, m, var = (s.reshape(1, -1, 1, 1) for s in stats)
        return (v - m) / jnp.sqrt(var + eps) * g + b

    def silu(v):
        return v / (1.0 + jnp.exp(-v))

    h = x
    if expand_ratio != 1:
        h = jax.lax.conv_general_dilated(
            h, params["w_exp"][:, :, None, None], (1, 1), "VALID",
            dimension_numbers=("NCHW", "OIHW", "NCHW"), precision=hp)
        h = silu(bn(h, params["bn1"]))
    h = jax.lax.conv_general_dilated(
        h, params["w_dw"][:, None, :, :], (stride, stride), ((1, 1), (1, 1)),
        dimension_numbers=("NCHW", "OIHW", "NCHW"),
        feature_group_count=hidden, precision=hp)
    h = silu(bn(h, params["bn2"]))
    h = jax.lax.conv_general_dilated(
        h, params["w_red"][:, :, None, None], (1, 1), "VALID",
        dimension_numbers=("NCHW", "OIHW", "NCHW"), precision=hp)
    h = bn(h, params["bn3"])
    if stride == 1 and C_in == C_out:
        h = x + h
    return h


if __name__ == "__main__":
    # Small shapes consistent with the module's forward: NCHW input.
    B, C_in, H, W = 2, 4, 16, 16
    expand_ratio = 4
    stride = 1
    C_out = 4                       # == C_in and stride == 1  ->  residual path
    hidden = int(round(C_in * expand_ratio))

    key = jax.random.PRNGKey(0)
    ks = jax.random.split(key, 8)

    def bn_params(k, c):
        kg, kb, km, kv = jax.random.split(k, 4)
        gamma = 1.0 + 0.1 * jax.random.normal(kg, (c,), jnp.float32)
        beta = 0.1 * jax.random.normal(kb, (c,), jnp.float32)
        mean = 0.1 * jax.random.normal(km, (c,), jnp.float32)
        var = jax.random.uniform(kv, (c,), jnp.float32, minval=0.5, maxval=1.5)
        return gamma, beta, mean, var

    params = {
        "w_exp": 0.3 * jax.random.normal(ks[0], (hidden, C_in), jnp.float32),
        "bn1": bn_params(ks[1], hidden),
        "w_dw": 0.3 * jax.random.normal(ks[2], (hidden, 3, 3), jnp.float32),
        "bn2": bn_params(ks[3], hidden),
        "w_red": 0.3 * jax.random.normal(ks[4], (C_out, hidden), jnp.float32),
        "bn3": bn_params(ks[5], C_out),
    }
    x = jax.random.normal(ks[6], (B, C_in, H, W), jnp.float32)

    out = inverted_residual_forward(x, params, stride=stride,
                                    expand_ratio=expand_ratio)
    out = jax.block_until_ready(out)

    ref = reference_forward(x, params, stride=stride, expand_ratio=expand_ratio)
    assert out.shape == ref.shape == (B, C_out, H, W), (out.shape, ref.shape)
    max_err = float(jnp.max(jnp.abs(out - ref)))
    # tolerance covers MXU f32 multi-pass / EUP exp rounding differences
    assert jnp.allclose(out, ref, atol=1e-3, rtol=1e-3), f"max abs err {max_err}"

    print("KERNEL_OK")
</pallas_src>

<mosaic_0001>
module attributes {stable_mosaic.version = 11 : i64} {
  func.func @inverted_residual_kernel(%arg0: i32, %arg1: memref<4x512xf32, #tpu.memory_space<vmem>>, %arg2: memref<16x4xf32, #tpu.memory_space<vmem>>, %arg3: memref<16x9xf32, #tpu.memory_space<vmem>>, %arg4: memref<9x512xf32, #tpu.memory_space<vmem>>, %arg5: memref<4x16xf32, #tpu.memory_space<vmem>>, %arg6: memref<36x1xf32, #tpu.memory_space<vmem>>, %arg7: memref<4x512xf32, #tpu.memory_space<vmem>>, %arg8: memref<16x768xf32, #tpu.memory_space<vmem>>) attributes {dimension_semantics = [#tpu.dimension_semantics<arbitrary>], iteration_bounds = array<i64: 1>, scalar_prefetch = 0 : i64, scratch_operands = 1 : i64, tpu.core_type = #tpu.core_type<tc>, window_params = [{pipeline_mode = #tpu.pipeline_mode<synchronous>, transform_indices = @transform_0, window_bounds = array<i64: 4, 512>}, {pipeline_mode = #tpu.pipeline_mode<synchronous>, transform_indices = @transform_1, window_bounds = array<i64: 16, 4>}, {pipeline_mode = #tpu.pipeline_mode<synchronous>, transform_indices = @transform_2, window_bounds = array<i64: 16, 9>}, {pipeline_mode = #tpu.pipeline_mode<synchronous>, transform_indices = @transform_3, window_bounds = array<i64: 9, 512>}, {pipeline_mode = #tpu.pipeline_mode<synchronous>, transform_indices = @transform_4, window_bounds = array<i64: 4, 16>}, {pipeline_mode = #tpu.pipeline_mode<synchronous>, transform_indices = @transform_5, window_bounds = array<i64: 36, 1>}, {pipeline_mode = #tpu.pipeline_mode<synchronous>, transform_indices = @transform_6, window_bounds = array<i64: 4, 512>}]} {
    %c0 = arith.constant 0 : index
    %c0_0 = arith.constant 0 : index
    %0 = vector.load %arg1[%c0, %c0_0] : memref<4x512xf32, #tpu.memory_space<vmem>>, vector<4x512xf32>
    %c0_1 = arith.constant 0 : index
    %c0_2 = arith.constant 0 : index
    %1 = vector.load %arg6[%c0_1, %c0_2] : memref<36x1xf32, #tpu.memory_space<vmem>>, vector<36x1xf32>
    %2 = vector.extract_strided_slice %1 {offsets = [16, 0], sizes = [16, 1], strides = [1, 1]} : vector<36x1xf32> to vector<16x1xf32>
    %3 = vector.extract_strided_slice %1 {offsets = [32, 0], sizes = [4, 1], strides = [1, 1]} : vector<36x1xf32> to vector<4x1xf32>
    %4 = vector.extract_strided_slice %1 {offsets = [0, 0], sizes = [16, 1], strides = [1, 1]} : vector<36x1xf32> to vector<16x1xf32>
    %c0_3 = arith.constant 0 : index
    %c0_4 = arith.constant 0 : index
    %5 = vector.load %arg2[%c0_3, %c0_4] : memref<16x4xf32, #tpu.memory_space<vmem>>, vector<16x4xf32>
    %cst = arith.constant dense<0.000000e+00> : vector<16x512xf32>
    %6 = tpu.matmul %5, %0, %cst {dimension_numbers = #tpu.dot_dimension_numbers<[1], [0], [0], [1], [0, 0, 1, 1], [], []>} : vector<16x4xf32>, vector<4x512xf32>, vector<16x512xf32> -> vector<16x512xf32>
    %7 = vector.broadcast %4 : vector<16x1xf32> to vector<16x512xf32>
    %8 = arith.addf %6, %7 : vector<16x512xf32>
    %cst_5 = arith.constant 0.000000e+00 : f32
    %9 = vector.broadcast %cst_5 : f32 to vector<16x512xf32>
    %10 = arith.subf %9, %8 : vector<16x512xf32>
    %11 = math.exp %10 : vector<16x512xf32>
    %cst_6 = arith.constant 1.000000e+00 : f32
    %12 = vector.broadcast %cst_6 : f32 to vector<16x512xf32>
    %13 = arith.addf %12, %11 : vector<16x512xf32>
    %14 = arith.divf %8, %13 : vector<16x512xf32>
    %cst_7 = arith.constant 0.000000e+00 : f32
    %15 = vector.broadcast %cst_7 : f32 to vector<16x768xf32>
    %c0_8 = arith.constant 0 : index
    %c0_9 = arith.constant 0 : index
    %16 = vector.load %arg8[%c0_8, %c0_9] : memref<16x768xf32, #tpu.memory_space<vmem>>, vector<16x768xf32>
    tpu.vector_store %arg8[%c0_8, %c0_9], %15 {strides = array<i32>} : memref<16x768xf32, #tpu.memory_space<vmem>>, vector<16x768xf32>,
    %c0_10 = arith.constant 0 : index
    %c128 = arith.constant 128 : index
    %17 = vector.load %arg8[%c0_10, %c128] : memref<16x768xf32, #tpu.memory_space<vmem>>, vector<16x512xf32>
    tpu.vector_store %arg8[%c0_10, %c128], %14 {strides = array<i32>} : memref<16x768xf32, #tpu.memory_space<vmem>>, vector<16x512xf32>,
    %c0_11 = arith.constant 0 : index
    %c0_12 = arith.constant 0 : index
    %18 = vector.load %arg3[%c0_11, %c0_12] : memref<16x9xf32, #tpu.memory_space<vmem>>, vector<16x9xf32>
    %c0_13 = arith.constant 0 : index
    %c0_14 = arith.constant 0 : index
    %19 = vector.load %arg4[%c0_13, %c0_14] : memref<9x512xf32, #tpu.memory_space<vmem>>, vector<9x512xf32>
    %cst_15 = arith.constant 0.000000e+00 : f32
    %20 = vector.broadcast %cst_15 : f32 to vector<16x512xf32>
    %c0_16 = arith.constant 0 : index
    %c111 = arith.constant 111 : index
    %21 = vector.load %arg8[%c0_16, %c111] : memref<16x768xf32, #tpu.memory_space<vmem>>, vector<16x512xf32>
    %22 = vector.extract_strided_slice %19 {offsets = [0, 0], sizes = [1, 512], strides = [1, 1]} : vector<9x512xf32> to vector<1x512xf32>
    %23 = vector.broadcast %22 : vector<1x512xf32> to vector<16x512xf32>
    %24 = arith.mulf %21, %23 : vector<16x512xf32>
    %25 = vector.extract_strided_slice %18 {offsets = [0, 0], sizes = [16, 1], strides = [1, 1]} : vector<16x9xf32> to vector<16x1xf32>
    %26 = vector.broadcast %25 : vector<16x1xf32> to vector<16x512xf32>
    %27 = arith.mulf %24, %26 : vector<16x512xf32>
    %28 = arith.addf %20, %27 : vector<16x512xf32>
    %c0_17 = arith.constant 0 : index
    %c112 = arith.constant 112 : index
    %29 = vector.load %arg8[%c0_17, %c112] : memref<16x768xf32, #tpu.memory_space<vmem>>, vector<16x512xf32>
    %30 = vector.extract_strided_slice %19 {offsets = [1, 0], sizes = [1, 512], strides = [1, 1]} : vector<9x512xf32> to vector<1x512xf32>
    %31 = vector.broadcast %30 : vector<1x512xf32> to vector<16x512xf32>
    %32 = arith.mulf %29, %31 : vector<16x512xf32>
    %33 = vector.extract_strided_slice %18 {offsets = [0, 1], sizes = [16, 1], strides = [1, 1]} : vector<16x9xf32> to vector<16x1xf32>
    %34 = vector.broadcast %33 : vector<16x1xf32> to vector<16x512xf32>
    %35 = arith.mulf %32, %34 : vector<16x512xf32>
    %36 = arith.addf %28, %35 : vector<16x512xf32>
    %c0_18 = arith.constant 0 : index
    %c113 = arith.constant 113 : index
    %37 = vector.load %arg8[%c0_18, %c113] : memref<16x768xf32, #tpu.memory_space<vmem>>, vector<16x512xf32>
    %38 = vector.extract_strided_slice %19 {offsets = [2, 0], sizes = [1, 512], strides = [1, 1]} : vector<9x512xf32> to vector<1x512xf32>
    %39 = vector.broadcast %38 : vector<1x512xf32> to vector<16x512xf32>
    %40 = arith.mulf %37, %39 : vector<16x512xf32>
    %41 = vector.extract_strided_slice %18 {offsets = [0, 2], sizes = [16, 1], strides = [1, 1]} : vector<16x9xf32> to vector<16x1xf32>
    %42 = vector.broadcast %41 : vector<16x1xf32> to vector<16x512xf32>
    %43 = arith.mulf %40, %42 : vector<16x512xf32>
    %44 = arith.addf %36, %43 : vector<16x512xf32>
    %c0_19 = arith.constant 0 : index
    %c127 = arith.constant 127 : index
    %45 = vector.load %arg8[%c0_19, %c127] : memref<16x768xf32, #tpu.memory_space<vmem>>, vector<16x512xf32>
    %46 = vector.extract_strided_slice %19 {offsets = [3, 0], sizes = [1, 512], strides = [1, 1]} : vector<9x512xf32> to vector<1x512xf32>
    %47 = vector.broadcast %46 : vector<1x512xf32> to vector<16x512xf32>
    %48 = arith.mulf %45, %47 : vector<16x512xf32>
    %49 = vector.extract_strided_slice %18 {offsets = [0, 3], sizes = [16, 1], strides = [1, 1]} : vector<16x9xf32> to vector<16x1xf32>
    %50 = vector.broadcast %49 : vector<16x1xf32> to vector<16x512xf32>
    %51 = arith.mulf %48, %50 : vector<16x512xf32>
    %52 = arith.addf %44, %51 : vector<16x512xf32>
    %c0_20 = arith.constant 0 : index
    %c128_21 = arith.constant 128 : index
    %53 = vector.load %arg8[%c0_20, %c128_21] : memref<16x768xf32, #tpu.memory_space<vmem>>, vector<16x512xf32>
    %54 = vector.extract_strided_slice %19 {offsets = [4, 0], sizes = [1, 512], strides = [1, 1]} : vector<9x512xf32> to vector<1x512xf32>
    %55 = vector.broadcast %54 : vector<1x512xf32> to vector<16x512xf32>
    %56 = arith.mulf %53, %55 : vector<16x512xf32>
    %57 = vector.extract_strided_slice %18 {offsets = [0, 4], sizes = [16, 1], strides = [1, 1]} : vector<16x9xf32> to vector<16x1xf32>
    %58 = vector.broadcast %57 : vector<16x1xf32> to vector<16x512xf32>
    %59 = arith.mulf %56, %58 : vector<16x512xf32>
    %60 = arith.addf %52, %59 : vector<16x512xf32>
    %c0_22 = arith.constant 0 : index
    %c129 = arith.constant 129 : index
    %61 = vector.load %arg8[%c0_22, %c129] : memref<16x768xf32, #tpu.memory_space<vmem>>, vector<16x512xf32>
    %62 = vector.extract_strided_slice %19 {offsets = [5, 0], sizes = [1, 512], strides = [1, 1]} : vector<9x512xf32> to vector<1x512xf32>
    %63 = vector.broadcast %62 : vector<1x512xf32> to vector<16x512xf32>
    %64 = arith.mulf %61, %63 : vector<16x512xf32>
    %65 = vector.extract_strided_slice %18 {offsets = [0, 5], sizes = [16, 1], strides = [1, 1]} : vector<16x9xf32> to vector<16x1xf32>
    %66 = vector.broadcast %65 : vector<16x1xf32> to vector<16x512xf32>
    %67 = arith.mulf %64, %66 : vector<16x512xf32>
    %68 = arith.addf %60, %67 : vector<16x512xf32>
    %c0_23 = arith.constant 0 : index
    %c143 = arith.constant 143 : index
    %69 = vector.load %arg8[%c0_23, %c143] : memref<16x768xf32, #tpu.memory_space<vmem>>, vector<16x512xf32>
    %70 = vector.extract_strided_slice %19 {offsets = [6, 0], sizes = [1, 512], strides = [1, 1]} : vector<9x512xf32> to vector<1x512xf32>
    %71 = vector.broadcast %70 : vector<1x512xf32> to vector<16x512xf32>
    %72 = arith.mulf %69, %71 : vector<16x512xf32>
    %73 = vector.extract_strided_slice %18 {offsets = [0, 6], sizes = [16, 1], strides = [1, 1]} : vector<16x9xf32> to vector<16x1xf32>
    %74 = vector.broadcast %73 : vector<16x1xf32> to vector<16x512xf32>
    %75 = arith.mulf %72, %74 : vector<16x512xf32>
    %76 = arith.addf %68, %75 : vector<16x512xf32>
    %c0_24 = arith.constant 0 : index
    %c144 = arith.constant 144 : index
    %77 = vector.load %arg8[%c0_24, %c144] : memref<16x768xf32, #tpu.memory_space<vmem>>, vector<16x512xf32>
    %78 = vector.extract_strided_slice %19 {offsets = [7, 0], sizes = [1, 512], strides = [1, 1]} : vector<9x512xf32> to vector<1x512xf32>
    %79 = vector.broadcast %78 : vector<1x512xf32> to vector<16x512xf32>
    %80 = arith.mulf %77, %79 : vector<16x512xf32>
    %81 = vector.extract_strided_slice %18 {offsets = [0, 7], sizes = [16, 1], strides = [1, 1]} : vector<16x9xf32> to vector<16x1xf32>
    %82 = vector.broadcast %81 : vector<16x1xf32> to vector<16x512xf32>
    %83 = arith.mulf %80, %82 : vector<16x512xf32>
    %84 = arith.addf %76, %83 : vector<16x512xf32>
    %c0_25 = arith.constant 0 : index
    %c145 = arith.constant 145 : index
    %85 = vector.load %arg8[%c0_25, %c145] : memref<16x768xf32, #tpu.memory_space<vmem>>, vector<16x512xf32>
    %86 = vector.extract_strided_slice %19 {offsets = [8, 0], sizes = [1, 512], strides = [1, 1]} : vector<9x512xf32> to vector<1x512xf32>
    %87 = vector.broadcast %86 : vector<1x512xf32> to vector<16x512xf32>
    %88 = arith.mulf %85, %87 : vector<16x512xf32>
    %89 = vector.extract_strided_slice %18 {offsets = [0, 8], sizes = [16, 1], strides = [1, 1]} : vector<16x9xf32> to vector<16x1xf32>
    %90 = vector.broadcast %89 : vector<16x1xf32> to vector<16x512xf32>
    %91 = arith.mulf %88, %90 : vector<16x512xf32>
    %92 = arith.addf %84, %91 : vector<16x512xf32>
    %93 = vector.broadcast %2 : vector<16x1xf32> to vector<16x512xf32>
    %94 = arith.addf %92, %93 : vector<16x512xf32>
    %cst_26 = arith.constant 0.000000e+00 : f32
    %95 = vector.broadcast %cst_26 : f32 to vector<16x512xf32>
    %96 = arith.subf %95, %94 : vector<16x512xf32>
    %97 = math.exp %96 : vector<16x512xf32>
    %cst_27 = arith.constant 1.000000e+00 : f32
    %98 = vector.broadcast %cst_27 : f32 to vector<16x512xf32>
    %99 = arith.addf %98, %97 : vector<16x512xf32>
    %100 = arith.divf %94, %99 : vector<16x512xf32>
    %c0_28 = arith.constant 0 : index
    %c0_29 = arith.constant 0 : index
    %101 = vector.load %arg5[%c0_28, %c0_29] : memref<4x16xf32, #tpu.memory_space<vmem>>, vector<4x16xf32>
    %cst_30 = arith.constant dense<0.000000e+00> : vector<4x512xf32>
    %102 = tpu.matmul %101, %100, %cst_30 {dimension_numbers = #tpu.dot_dimension_numbers<[1], [0], [0], [1], [0, 0, 1, 1], [], []>} : vector<4x16xf32>, vector<16x512xf32>, vector<4x512xf32> -> vector<4x512xf32>
    %103 = vector.broadcast %3 : vector<4x1xf32> to vector<4x512xf32>
    %104 = arith.addf %102, %103 : vector<4x512xf32>
    %105 = arith.addf %104, %0 : vector<4x512xf32>
    %c0_31 = arith.constant 0 : index
    %c0_32 = arith.constant 0 : index
    %106 = vector.load %arg7[%c0_31, %c0_32] : memref<4x512xf32, #tpu.memory_space<vmem>>, vector<4x512xf32>
    tpu.vector_store %arg7[%c0_31, %c0_32], %105 {strides = array<i32>} : memref<4x512xf32, #tpu.memory_space<vmem>>, vector<4x512xf32>,
    return
  }
  func.func @transform_0(%arg0: i32) -> (i32, i32) {
    %c0_i32 = arith.constant 0 : i32
    %c0_i32_0 = arith.constant 0 : i32
    %c0_i32_1 = arith.constant 0 : i32
    return %c0_i32, %c0_i32_0 : i32, i32
  }
  func.func @transform_1(%arg0: i32) -> (i32, i32) {
    %c0_i32 = arith.constant 0 : i32
    %c0_i32_0 = arith.constant 0 : i32
    %c0_i32_1 = arith.constant 0 : i32
    return %c0_i32, %c0_i32_0 : i32, i32
  }
  func.func @transform_2(%arg0: i32) -> (i32, i32) {
    %c0_i32 = arith.constant 0 : i32
    %c0_i32_0 = arith.constant 0 : i32
    %c0_i32_1 = arith.constant 0 : i32
    return %c0_i32, %c0_i32_0 : i32, i32
  }
  func.func @transform_3(%arg0: i32) -> (i32, i32) {
    %c0_i32 = arith.constant 0 : i32
    %c0_i32_0 = arith.constant 0 : i32
    %c0_i32_1 = arith.constant 0 : i32
    return %c0_i32, %c0_i32_0 : i32, i32
  }
  func.func @transform_4(%arg0: i32) -> (i32, i32) {
    %c0_i32 = arith.constant 0 : i32
    %c0_i32_0 = arith.constant 0 : i32
    %c0_i32_1 = arith.constant 0 : i32
    return %c0_i32, %c0_i32_0 : i32, i32
  }
  func.func @transform_5(%arg0: i32) -> (i32, i32) {
    %c0_i32 = arith.constant 0 : i32
    %c0_i32_0 = arith.constant 0 : i32
    %c0_i32_1 = arith.constant 0 : i32
    return %c0_i32, %c0_i32_0 : i32, i32
  }
  func.func @transform_6(%arg0: i32) -> (i32, i32) {
    %c0_i32 = arith.constant 0 : i32
    %c0_i32_0 = arith.constant 0 : i32
    %c0_i32_1 = arith.constant 0 : i32
    return %c0_i32, %c0_i32_0 : i32, i32
  }
}

</mosaic_0001>

<bundles_post_ra>
// kernel: tpu_custom_call.1
= control target key start
LH: loop header
LB: loop body
LE: loop exit
PB: predicated region body
PF: predicated region fallthrough
CT: control target
= control target key end

     0   :  { %11 = vsyncpa [#allocation4], 0  ;;  %s2958_s0 = inlined_call_operand.hbm [shape: f32[4,512], index: 0, kind: input, shape index: {}]   ;;  %s2959_s1 = inlined_call_operand.vmem [shape: f32[16,4], index: 1, kind: input, shape index: {}]   ;;  %s2960_s2 = inlined_call_operand.hbm [shape: f32[16,9], index: 2, kind: input, shape index: {}]   ;;  %s2961_s3 = inlined_call_operand.vmem [shape: f32[9,512], index: 3, kind: input, shape index: {}]   ;;  %s2962_s4 = inlined_call_operand.vmem [shape: f32[4,16], index: 4, kind: input, shape index: {}]   ;;  %s2963_s5 = inlined_call_operand.vmem [shape: f32[36,1], index: 5, kind: input, shape index: {}]   ;;  %s2964_s6 = inlined_call_operand.hbm [shape: f32[4,512], index: 6, kind: output, shape index: {}]  }
   0x1   :  { %12 = vsyncpa [#allocation7], 0 }
   0x2   :  { %13 = vsyncpa [#allocation5], 0  ;;  %s1922_s21 = smov [#allocation3]   ;;  %s1923_s23 = smov [#allocation6]  }
   0x3   :  { %s20_s22 = sshll.u32 %s1922_s21, 4  ;;  %s31_s24 = sshll.u32 %s1923_s23, 4  ;;  %s21_s22 = int_to_ptr.vmem [resolvable:$true] %s20_s22  ;;  %s1985_s24 = int_to_ptr.vmem [resolvable:$true] %s31_s24 }
   0x4   :  { %s1850_s27 = scalar_lea.hbm %s2958_s0, 256 }
   0x5   :  { %p1851_p0 = scmp.ne.s32.totalorder %s2958_s0, %s1850_s27  ;;  %p1854_p1 = scmp.lt.u32.totalorder %s1850_s27, %s2958_s0 }
   0x7   :  { %p1856_p2 = pnand %p1854_p1, %p1851_p0 }
   0x9   :  { %1859 = shalt.err (!%p1856_p2)
}
   0xa   :  { %s1860_s8 = scalar_lea.vmem %s21_s22, 256  ;;  %p1865_p4 = scmp.lt.s32.totalorder %s21_s22, %s21_s22 }
   0xb   :  { %p1861_p3 = scmp.ne.s32.totalorder %s21_s22, %s1860_s8  ;;  %p1866_p5 = scmp.lt.s32.totalorder %s1860_s8, %s1860_s8 }
   0xd   :  { %p1867_p6 = por %p1866_p5, %p1865_p4 }
   0xf   :  { %p1868_p7 = pnand %p1867_p6, %p1861_p3 }
  0x11   :  { %1871 = shalt.err (!%p1868_p7)
}
  0x12   :  { %23 = dma.hbm_to_vmem [thread:$0]  %s2958_s0, 256, %s21_s22, [#allocation4]  }
  0x13   :  { %s1872_s13 = scalar_lea.hbm %s2960_s2, 256 }
  0x14   :  { %p1873_p8 = scmp.ne.s32.totalorder %s2960_s2, %s1872_s13  ;;  %p1876_p9 = scmp.lt.u32.totalorder %s1872_s13, %s2960_s2 }
  0x16   :  { %p1878_p10 = pnand %p1876_p9, %p1873_p8 }
  0x18   :  { %1881 = shalt.err (!%p1878_p10)
}
  0x19   :  { %s1882_s18 = scalar_lea.vmem %s1985_s24, 256  ;;  %p1887_p12 = scmp.lt.s32.totalorder %s1985_s24, %s1985_s24 }
  0x1a   :  { %p1883_p11 = scmp.ne.s32.totalorder %s1985_s24, %s1882_s18  ;;  %p1888_p13 = scmp.lt.s32.totalorder %s1882_s18, %s1882_s18 }
  0x1c   :  { %p1889_p0 = por %p1888_p13, %p1887_p12 }
  0x1e   :  { %p1890_p1 = pnand %p1889_p0, %p1883_p11 }
  0x20   :  { %1893 = shalt.err (!%p1890_p1)
}
  0x21   :  { %s1924_s0 = smov 128   ;;  %s1925_s19 = smov 8  }
  0x22   :  { %37 = dma.hbm_to_vmem [thread:$0]  %s2960_s2, 256, %s1985_s24, [#allocation7], %s1924_s0, %s1924_s0, %s1925_s19  }
  0x23   :  { %1916 = dma.done.wait [#allocation4], 256  }
  0x24   :  { %1917 = vsyncadd [#allocation4], 4294967040 }
  0x25   :  { %1918 = dma.done.wait [#allocation7], 256  }
  0x26   :  { %1919 = vsyncadd [#allocation7], 4294967040  ;;  %v1926_v0 = vmov 1   ;;  %v1927_v1 = vmov 0.0   ;;  %v331_v2 = vlaneseq  ;;  %v1928_v3 = vmov 2   ;;  %v2019_v6 = vld [vmem:[#allocation6] sm:$0xff] }
  0x27   :  { %1733 = vset.pattern.permute.xlu1 %v1926_v0  ;;  %153 = vmatprep.mubr.f32.mxu0 %v1927_v1  ;;  %v50_v7 = vld [vmem:[#allocation3] sm:$0xff]  ;;  %vm80_vm0 = vcmask 1043456   ;;  %v51_v8 = vld [vmem:[#allocation3 + $0x8] sm:$0xff]  ;;  %v2027_v11 = vld [vmem:[#allocation6 + $0x8] sm:$0xff]  ;;  %vm73_vm1 = vcmask 31744   ;;  %s1929_s29 = smov 112  }
  0x28   :  { %230 = vmatprep.mubr.f32.mxu1 %v1927_v1  ;;  %1734 = vset.pattern.permute.xlu0 %v1928_v3  ;;  %v2016_v4 = vshrl.u32 %v331_v2, 7  ;;  %v2022_v9 = vcombine.high %v50_v7, %v50_v7  ;;  %v2024_v10 = vcombine.high %v51_v8, %v51_v8  ;;  %v57_v12 = vld [vmem:[%s2959_s1] sm:$0xff]  ;;  %v2035_v13 = vld [vmem:[%s2961_s3 + $0x8] sm:$0xff]  ;;  %v2043_v15 = vld [vmem:[%s2961_s3 + $0x18] sm:$0xff]  ;;  %v1930_v19 = vmov 3   ;;  %s1931_s9 = smov 113  }
  0x29   :  { %456 = vperm.xlu1 %1733, %v2019_v6   ;;  %580 = vperm.xlu0 %1734, %v2019_v6   ;;  %v58_v16 = vld [vmem:[%s2959_s1 + $0x8] sm:$0xff]  ;;  %v2055_v17 = vld [vmem:[%s2961_s3] sm:$0xff]  ;;  %v2066_v21 = vld [vmem:[%s2961_s3 + $0x10] sm:$0xff]  ;;  %v1932_v26 = vmov 4   ;;  %s1933_s10 = smov 127   ;;  %v1934_v31 = vmov 5  }
  0x2a   :  { %v410_v5 = vsub.s32 1, %v2016_v4  ;;  %2989 = vst [vmem:[#allocation12_spill] sm:$0xff] %v2022_v9  ;;  %2990 = vst [vmem:[#allocation13_spill] sm:$0xff] %v2024_v10  ;;  %1683 = vmatprep.subr.msk.mxu0 %vm80_vm0, %v2022_v9  ;;  %1687 = vmatprep.subr.msk.mxu1 %vm80_vm0, %v2024_v10  ;;  %v534_v22 = vsub.s32 2, %v2016_v4  ;;  %v658_v25 = vsub.s32 3, %v2016_v4  ;;  %v880_v33 = vsub.s32 5, %v2016_v4 }
  0x2b   :  { %1684 = vmatpush1.msk.msra.mxu0 %vm80_vm0, %v50_v7  ;;  %1688 = vmatpush1.msk.msra.mxu1 %vm80_vm0, %v51_v8  ;;  %s1935_s11 = smov 1   ;;  %v1936_v37 = vmov 7   ;;  %v1004_v39 = vsub.s32 6, %v2016_v4  ;;  %s1937_s12 = smov 15   ;;  %v1938_v42 = vmov 8   ;;  %v1939_v43 = vmov 6  }
  0x2c   :  { %v415_v14 = vrot.slane %v2035_v13, %v410_v5  ;;  %1685 = vmatmul.mubr.msk.f32.vlgmr.msra.gmra.mrb[0].mxu0 %vm73_vm1, %v57_v12  ;;  %1689 = vmatmul.mubr.msk.f32.vlgmr.msra.gmra.mrb[0].mxu1 %vm73_vm1, %v57_v12  ;;  %v423_v18 = vrot.slane %v2043_v15, %v410_v5  ;;  %v411_v20 = vrot.slane %v2055_v17, %v410_v5  ;;  %v52_v45 = vld [vmem:[%s2963_s5] sm:$0xff]  ;;  %v1940_v47 = vmov 0   ;;  %v53_v49 = vld [vmem:[%s2963_s5 + $0x8] sm:$0xff]  ;;  %s1941_s17 = smov 16   ;;  %s1942_s19 = smov 17  }
  0x2d   :  { %460 = vperm.xlu1 %1733, %v2027_v11   ;;  %159 = vmatprep.mubr.f32.mxu0 %v1927_v1  ;;  %v419_v23 = vrot.slane %v2066_v21, %v410_v5  ;;  %v543_v24 = vrot.slane %v2066_v21, %v534_v22  ;;  %v535_v27 = vrot.slane %v2055_v17, %v534_v22  ;;  %v1128_v48 = vsub.s32 7, %v2016_v4  ;;  %v1691_v52 = vld [vmem:[%s2961_s3 + $0x20] ss:$0 sm:$0xff]  ;;  %v1693_v54 = vld [vmem:[%s2961_s3 + $0x30] ss:$0 sm:$0xff]  ;;  %s1943_s2 = smov 111  }
  0x2e   :  { %236 = vmatprep.mubr.f32.mxu1 %v1927_v1  ;;  %430 = vrot.lane.b32.xlu0 %v415_v14, %s1929_s29  ;;  %v663_v28 = vrot.slane %v2035_v13, %v658_v25  ;;  %v539_v29 = vrot.slane %v2035_v13, %v534_v22  ;;  %v671_v30 = vrot.slane %v2043_v15, %v658_v25  ;;  %v333_v55 = vsub.s32 0, %v2016_v4  ;;  %v1692_v61 = vld [vmem:[%s2961_s3 + $0x28] ss:$0 sm:$0xff]  ;;  %v1694_v62 = vld [vmem:[%s2961_s3 + $0x38] ss:$0 sm:$0xff]  ;;  %s1944_s3 = smov 126  }
  0x2f   :  { %1737 = vset.pattern.permute.xlu0 %v1930_v19  ;;  %v547_v32 = vrot.slane %v2043_v15, %v534_v22  ;;  %v881_v34 = vrot.slane %v2055_v17, %v880_v33  ;;  %v659_v35 = vrot.slane %v2055_v17, %v658_v25  ;;  %v889_v36 = vrot.slane %v2066_v21, %v880_v33  ;;  %s1945_s28 = smov 110   ;;  %s1946_s30 = smov 96  }
  0x30   :  { %1686 = vmatmul.mubr.msk.f32.gmra.mrb[2].mxu0 %vm73_vm1, %v58_v16  ;;  %1690 = vmatmul.mubr.msk.f32.gmra.mrb[2].mxu1 %vm73_vm1, %v58_v16  ;;  %v667_v38 = vrot.slane %v2066_v21, %v658_v25  ;;  %v1009_v40 = vrot.slane %v2035_v13, %v1004_v39  ;;  %v1017_v41 = vrot.slane %v2043_v15, %v1004_v39  ;;  %s1947_s8 = smov 95   ;;  %vm359_vm2 = vcmask 908288  }
  0x31   :  { %1735 = vset.pattern.permute.xlu1 %v1928_v3  ;;  %1573 = vmatprep.mubr.f32.mxu0 %v1927_v1  ;;  %v885_v44 = vrot.slane %v2035_v13, %v880_v33  ;;  %v893_v46 = vrot.slane %v2043_v15, %v880_v33  ;;  %v1137_v50 = vrot.slane %v2066_v21, %v1128_v48  ;;  %vm436_vm3 = vcmask 916480  }
  0x32   :  { %584 = vperm.xlu1 %1735, %v2027_v11   ;;  %434 = vrot.lane.b32.xlu0 %v423_v18, %s1929_s29  ;;  %v1005_v51 = vrot.slane %v2055_v17, %v1004_v39  ;;  %v1013_v53 = vrot.slane %v2066_v21, %v1004_v39  ;;  %v1129_v56 = vrot.slane %v2055_v17, %v1128_v48  ;;  %vm1278_vm4 = vcmask 138240  }
  0x33   :  { %1644 = vmatprep.mubr.f32.mxu1 %v1927_v1  ;;  %v338_v57 = vrot.slane %v2035_v13, %v333_v55  ;;  %v1133_v58 = vrot.slane %v2035_v13, %v1128_v48  ;;  %v346_v59 = vrot.slane %v2043_v15, %v333_v55  ;;  %v1141_v60 = vrot.slane %v2043_v15, %v1128_v48  ;;  %v54_v1 = vld [vmem:[%s2963_s5 + $0x10] sm:$0xff] }
  0x34   :  { %v334_v63 = vrot.slane %v2055_v17, %v333_v55  ;;  %v342_v0 = vrot.slane %v2066_v21, %v333_v55  ;;  %vm560_vm5 = vcmask 924672   ;;  %vm1154_vm6 = vcmask 130048  }
  0x35   :  { %vm503_vm7 = vcmask 1039360   ;;  %vm906_vm8 = vcmask 7168   ;;  %vm1030_vm9 = vcmask 121856   ;;  %vm627_vm10 = vcmask 1031168  }
  0x36   :  { %428 = vrot.lane.b32.xlu1 %v411_v20, %s1929_s29  ;;  %707 = vperm.xlu0 %1737, %v2027_v11   ;;  %vm973_vm11 = vcmask 900096   ;;  %vm1097_vm12 = vcmask 785408   ;;  %vm1221_vm13 = vcmask 777216   ;;  %vm1345_vm14 = vcmask 769024  }
  0x37   :  { %1736 = vset.pattern.permute.xlu1 %v1930_v19 }
  0x3a   :  { %432 = vrot.lane.b32.xlu1 %v419_v23, %s1929_s29  ;;  %556 = vrot.lane.b32.xlu0 %v543_v24, %s1931_s9 }
  0x3b   :  { %1738 = vset.pattern.permute.xlu0 %v1932_v26 }
  0x3e   :  { %703 = vperm.xlu1 %1736, %v2019_v6   ;;  %803 = vperm.xlu0 %1738, %v2019_v6  }
  0x42   :  { %552 = vrot.lane.b32.xlu1 %v535_v27, %s1931_s9  ;;  %678 = vrot.lane.b32.xlu0 %v663_v28, %s1933_s10 }
  0x43   :  { %1739 = vset.pattern.permute.xlu1 %v1932_v26  ;;  %1741 = vset.pattern.permute.xlu0 %v1934_v31 }
  0x46   :  { %554 = vrot.lane.b32.xlu1 %v539_v29, %s1931_s9  ;;  %682 = vrot.lane.b32.xlu0 %v671_v30, %s1933_s10 }
  0x4a   :  { %558 = vrot.lane.b32.xlu1 %v547_v32, %s1931_s9  ;;  %930 = vperm.xlu0 %1741, %v2027_v11   ;;  %s1948_s9 = smov 94  }
  0x4e   :  { %807 = vperm.xlu1 %1739, %v2027_v11   ;;  %898 = vrot.lane.b32.xlu0 %v881_v34, %s1935_s11 }
  0x4f   :  { %1743 = vset.pattern.permute.xlu0 %v1936_v37 }
  0x52   :  { %676 = vrot.lane.b32.xlu1 %v659_v35, %s1933_s10  ;;  %902 = vrot.lane.b32.xlu0 %v889_v36, %s1935_s11 }
  0x53   :  { %1740 = vset.pattern.permute.xlu1 %v1934_v31 }
  0x56   :  { %680 = vrot.lane.b32.xlu1 %v667_v38, %s1933_s10  ;;  %1174 = vperm.xlu0 %1743, %v2019_v6  }
  0x5a   :  { %926 = vperm.xlu1 %1740, %v2019_v6   ;;  %1024 = vrot.lane.b32.xlu0 %v1009_v40, %s1937_s12 }
  0x5b   :  { %1746 = vset.pattern.permute.xlu0 %v1938_v42 }
  0x5e   :  { %1742 = vset.pattern.permute.xlu1 %v1939_v43  ;;  %1028 = vrot.lane.b32.xlu0 %v1017_v41, %s1937_s12 }
  0x5f   :  { %1050 = vperm.xlu1 %1742, %v2019_v6  }
  0x62   :  { %1302 = vperm.xlu0 %1746, %v2027_v11  }
  0x63   :  { %1054 = vperm.xlu1 %1742, %v2027_v11  }
  0x66   :  { %1747 = vset.pattern.permute.xlu0 %v1940_v47 }
  0x67   :  { %900 = vrot.lane.b32.xlu1 %v885_v44, %s1935_s11  ;;  %61 = vperm.xlu0 %1747, %v52_v45  }
  0x68   :  { %1744 = vset.pattern.permute.xlu1 %v1936_v37 }
  0x6b   :  { %904 = vrot.lane.b32.xlu1 %v893_v46, %s1935_s11  ;;  %66 = vperm.xlu0 %1747, %v53_v49  }
  0x6f   :  { %1178 = vperm.xlu1 %1744, %v2027_v11   ;;  %1150 = vrot.lane.b32.xlu0 %v1137_v50, %s1941_s17 }
  0x73   :  { %1022 = vrot.lane.b32.xlu1 %v1005_v51, %s1937_s12  ;;  %1270 = vrot.lane.b32.xlu0 %v1691_v52, %s1942_s19 }
  0x74   :  { %1745 = vset.pattern.permute.xlu1 %v1938_v42 }
  0x77   :  { %1026 = vrot.lane.b32.xlu1 %v1013_v53, %s1937_s12  ;;  %1274 = vrot.lane.b32.xlu0 %v1693_v54, %s1942_s19 }
  0x7b   :  { %1298 = vperm.xlu1 %1745, %v2019_v6   ;;  %380 = vperm.xlu0 %1747, %v2019_v6  }
  0x7f   :  { %1146 = vrot.lane.b32.xlu1 %v1129_v56, %s1941_s17  ;;  %353 = vrot.lane.b32.xlu0 %v338_v57, %s1943_s2 }
  0x80   :  { %1748 = vset.pattern.permute.xlu1 %v1940_v47 }
  0x83   :  { %1148 = vrot.lane.b32.xlu1 %v1133_v58, %s1941_s17  ;;  %357 = vrot.lane.b32.xlu0 %v346_v59, %s1943_s2 }
  0x87   :  { %1152 = vrot.lane.b32.xlu1 %v1141_v60, %s1941_s17  ;;  %v55_v60 = vld [vmem:[%s2963_s5 + $0x18] sm:$0xff] }
  0x8b   :  { %1272 = vrot.lane.b32.xlu1 %v1692_v61, %s1942_s19 }
  0x8f   :  { %1276 = vrot.lane.b32.xlu1 %v1694_v62, %s1942_s19 }
  0x93   :  { %385 = vperm.xlu1 %1748, %v2027_v11  }
  0x97   :  { %351 = vrot.lane.b32.xlu1 %v334_v63, %s1943_s2 }
  0x9b   :  { %355 = vrot.lane.b32.xlu1 %v342_v0, %s1943_s2 }
  0x9f   :  { %1376 = vperm.xlu1 %1748, %v54_v1  }
  0xa8   :  { %v2156_v2 = vpop.permute.xlu1 %456  ;;  %v2158_v3 = vpop.permute.xlu0 %580 }
  0xac   :  { %v2160_v5 = vpop.permute.xlu1 %460  ;;  %v2162_v6 = vpop.permute.xlu0 %430 }
  0xad   :  { %2991 = vst [vmem:[#allocation14_spill] sm:$0xff] %v2160_v5 }
  0xb0   :  { %v2164_v7 = vpop.permute.xlu0 %434 }
  0xb1   :  { %v2166_v8 = vpop.permute.xlu1 %584 }
  0xb2   :  { %2992 = vst [vmem:[#allocation15_spill] sm:$0xff] %v2166_v8 }
  0xb5   :  { %v2168_v11 = vpop.permute.xlu1 %428  ;;  %v2171_v14 = vpop.permute.xlu0 %707 }
  0xb6   :  { %v445_v12 = vmul.f32 0.0, %v2168_v11  ;;  %2993 = vst [vmem:[#allocation16_spill] sm:$0xff] %v2171_v14 }
  0xb8   :  { %v463_v16 = vmul.f32 %v2156_v2, %v445_v12  ;;  %v468_v18 = vmul.f32 %v2160_v5, %v445_v12 }
  0xb9   :  { %v2175_v19 = vpop.permute.xlu1 %432  ;;  %v2179_v20 = vpop.permute.xlu0 %556 }
  0xba   :  { %483 = vrot.lane.b32.xlu1 %v463_v16, %s1933_s10  ;;  %493 = vrot.lane.b32.xlu0 %v468_v18, %s1933_s10 }
  0xbd   :  { %v2181_v22 = vpop.permute.xlu1 %703  ;;  %v2183_v23 = vpop.permute.xlu0 %803 }
  0xc1   :  { %v2185_v24 = vpop.permute.xlu1 %552  ;;  %v2188_v26 = vpop.permute.xlu0 %678 }
  0xc2   :  { %v569_v25 = vmul.f32 0.0, %v2185_v24 }
  0xc4   :  { %v587_v27 = vmul.f32 %v2158_v3, %v569_v25  ;;  %v592_v28 = vmul.f32 %v2166_v8, %v569_v25 }
  0xc5   :  { %v2192_v29 = vpop.permute.xlu1 %554  ;;  %v2196_v30 = vpop.permute.xlu0 %682 }
  0xc6   :  { %607 = vrot.lane.b32.xlu1 %v587_v27, %s1944_s3  ;;  %617 = vrot.lane.b32.xlu0 %v592_v28, %s1944_s3 }
  0xc9   :  { %v2198_v31 = vpop.permute.xlu1 %558  ;;  %v2200_v32 = vpop.permute.xlu0 %930 }
  0xca   :  { %2994 = vst [vmem:[#allocation17_spill] sm:$0xff] %v2200_v32 }
  0xcd   :  { %v2202_v33 = vpop.permute.xlu1 %807  ;;  %v2204_v34 = vpop.permute.xlu0 %898 }
  0xce   :  { %2995 = vst [vmem:[#allocation18_spill] sm:$0xff] %v2202_v33 }
  0xd1   :  { %v2206_v35 = vpop.permute.xlu1 %676  ;;  %v2209_v37 = vpop.permute.xlu0 %902 }
  0xd2   :  { %v692_v36 = vmul.f32 0.0, %v2206_v35 }
  0xd4   :  { %v710_v38 = vmul.f32 %v2181_v22, %v692_v36  ;;  %v715_v39 = vmul.f32 %v2171_v14, %v692_v36 }
  0xd5   :  { %v2213_v40 = vpop.permute.xlu1 %680  ;;  %v2217_v41 = vpop.permute.xlu0 %1174 }
  0xd6   :  { %730 = vrot.lane.b32.xlu1 %v710_v38, %s1929_s29  ;;  %740 = vrot.lane.b32.xlu0 %v715_v39, %s1929_s29  ;;  %2996 = vst [vmem:[#allocation19_spill] sm:$0xff] %v2217_v41 }
  0xd9   :  { %v2219_v42 = vpop.permute.xlu1 %926  ;;  %v2221_v43 = vpop.permute.xlu0 %1024 }
  0xdd   :  { %v2227_v46 = vpop.permute.xlu0 %1028 }
  0xde   :  { %v2223_v44 = vpop.permute.xlu1 %1050  ;;  %v1043_v51 = vmul.f32 0.0, %v2227_v46 }
  0xe0   :  { %v1061_v56 = vmul.f32 %v2223_v44, %v1043_v51 }
  0xe1   :  { %v2231_v48 = vpop.permute.xlu0 %1302 }
  0xe2   :  { %v2225_v45 = vpop.permute.xlu1 %1054  ;;  %2998 = vst [vmem:[#allocation21_spill] sm:$0xff] %v2231_v48 }
  0xe3   :  { %2997 = vst [vmem:[#allocation20_spill] sm:$0xff] %v2225_v45  ;;  %v1066_v57 = vmul.f32 %v2225_v45, %v1043_v51 }
  0xe6   :  { %v2229_v47 = vpop.permute.xlu1 %900  ;;  %v62_v54 = vpop.permute.xlu0 %61 }
  0xea   :  { %v2233_v49 = vpop.permute.xlu1 %904  ;;  %v67_v59 = vpop.permute.xlu0 %66 }
  0xeb   :  { %v919_v50 = vmul.f32 0.0, %v2233_v49 }
  0xed   :  { %v937_v52 = vmul.f32 %v2219_v42, %v919_v50  ;;  %v942_v53 = vmul.f32 %v2200_v32, %v919_v50 }
  0xee   :  { %v2239_v55 = vpop.permute.xlu1 %1178  ;;  %v2254_v62 = vpop.permute.xlu0 %1150 }
  0xef   :  { %2999 = vst [vmem:[#allocation22_spill] sm:$0xff] %v2239_v55  ;;  %961 = vrot.lane.b32.xlu1 %v937_v52, %s1945_s28  ;;  %971 = vrot.lane.b32.xlu0 %v942_v53, %s1945_s28 }
  0xf2   :  { %v2245_v58 = vpop.permute.xlu1 %1022  ;;  %v2260_v1 = vpop.permute.xlu0 %1270 }
  0xf3   :  { %1085 = vrot.lane.b32.xlu1 %v1061_v56, %s1946_s30  ;;  %1095 = vrot.lane.b32.xlu0 %v1066_v57, %s1946_s30 }
  0xf6   :  { %v2252_v61 = vpop.permute.xlu1 %1026  ;;  %v2287_v45 = vpop.permute.xlu0 %1274 }
  0xf7   :  { %1381 = vperm.xlu0 %1747, %v55_v60  }
  0xfa   :  { %v2256_v63 = vpop.permute.xlu1 %1298 }
  0xfb   :  { %3000 = vst [vmem:[#allocation23_spill] sm:$0xff] %v2256_v63 }
  0xfe   :  { %v2258_v0 = vpop.permute.xlu1 %1146 }
  0xff   :  { %v155_v12 = vpop.f32.mrb[0].mxu0  ;;  %v232_v18 = vpop.f32.mrb[0].mxu1 }
 0x100   :  { %v2262_v16 = vadd.f32 %v155_v12, %v62_v54  ;;  %v157_v25 = vpop.f32.mrb[1].mxu0  ;;  %v2264_v27 = vadd.f32 %v232_v18, %v62_v54  ;;  %v234_v36 = vpop.f32.mrb[1].mxu1 }
 0x101   :  { %v2266_v28 = vadd.f32 %v157_v25, %v62_v54  ;;  %v2271_v50 = vadd.f32 %v234_v36, %v62_v54 }
 0x102   :  { %v2268_v38 = vpop.permute.xlu1 %1148  ;;  %v243_v39 = vsub.f32 0.0, %v2262_v16  ;;  %v245_v51 = vsub.f32 0.0, %v2264_v27 }
 0x103   :  { %3001 = vst [vmem:[#allocation24_spill] sm:$0xff] %v2268_v38  ;;  %v244_v52 = vsub.f32 0.0, %v2266_v28  ;;  %v161_v53 = vpop.f32.mrb[2].mxu0  ;;  %v246_v57 = vsub.f32 0.0, %v2271_v50  ;;  %v238_v12 = vpop.f32.mrb[2].mxu1 }
 0x104   :  { %v251_v56 = vmul.f32 1.442695, %v243_v39  ;;  %v2276_v60 = vadd.f32 %v161_v53, %v67_v59  ;;  %v163_v18 = vpop.f32.mrb[3].mxu0  ;;  %v255_v25 = vmul.f32 1.442695, %v245_v51  ;;  %v2278_v9 = vadd.f32 %v238_v12, %v67_v59  ;;  %v240_v54 = vpop.f32.mrb[3].mxu1 }
 0x105   :  { %v253_v10 = vmul.f32 1.442695, %v244_v52  ;;  %v2280_v48 = vadd.f32 %v163_v18, %v67_v59  ;;  %v257_v33 = vmul.f32 1.442695, %v246_v57  ;;  %v2285_v39 = vadd.f32 %v240_v54, %v67_v59 }
 0x106   :  { %v2282_v36 = vpop.permute.xlu1 %1152  ;;  %1776 = vpow2.f32 %v251_v56  ;;  %v247_v14 = vsub.f32 0.0, %v2276_v60  ;;  %v249_v53 = vsub.f32 0.0, %v2278_v9 }
 0x107   :  { %1778 = vpow2.f32 %v255_v25  ;;  %v248_v51 = vsub.f32 0.0, %v2280_v48  ;;  %v250_v12 = vsub.f32 0.0, %v2285_v39  ;;  %v1167_v18 = vmul.f32 0.0, %v2282_v36 }
 0x108   :  { %1780 = vpow2.f32 %v253_v10  ;;  %v259_v52 = vmul.f32 1.442695, %v247_v14  ;;  %v263_v56 = vmul.f32 1.442695, %v249_v53  ;;  %v2299_v10 = vpop.permute.xlu0 %380 }
 0x109   :  { %1782 = vpow2.f32 %v257_v33  ;;  %v261_v57 = vmul.f32 1.442695, %v248_v51  ;;  %v265_v59 = vmul.f32 1.442695, %v250_v12  ;;  %v1185_v54 = vmul.f32 %v2217_v41, %v1167_v18  ;;  %3002 = vst [vmem:[#allocation25_spill] sm:$0xff] %v2299_v10 }
 0x10a   :  { %v2293_v8 = vpop.permute.xlu1 %1272  ;;  %1784 = vpow2.f32 %v259_v52  ;;  %v1190_v25 = vmul.f32 %v2239_v55, %v1167_v18 }
 0x10b   :  { %1786 = vpow2.f32 %v263_v56  ;;  %1209 = vrot.lane.b32.xlu1 %v1185_v54, %s1947_s8 }
 0x10c   :  { %1788 = vpow2.f32 %v261_v57  ;;  %1219 = vrot.lane.b32.xlu0 %v1190_v25, %s1947_s8  ;;  %v354_v56 = vpop.permute.xlu0 %353 }
 0x10d   :  { %1790 = vpow2.f32 %v265_v59 }
 0x10e   :  { %v1277_v14 = vpop.permute.xlu1 %1276 }
 0x10f   :  { %v2301_v33 = vmul.f32 0.0, %v1277_v14 }
 0x110   :  { %v1777_v53 = vpop.eup %1776 }
 0x111   :  { %3003 = vst [vmem:[#allocation26_spill] sm:$0xff] %v2301_v33  ;;  %v1309_v51 = vmul.f32 %v2256_v63, %v2301_v33  ;;  %v1779_v52 = vpop.eup %1778  ;;  %v267_v12 = vadd.f32 1.0, %v1777_v53 }
 0x112   :  { %v2305_v18 = vpop.permute.xlu1 %385  ;;  %v1781_v57 = vpop.eup %1780  ;;  %v269_v55 = vadd.f32 1.0, %v1779_v52 }
 0x113   :  { %1333 = vrot.lane.b32.xlu1 %v1309_v51, %s1948_s9  ;;  %v1783_v54 = vpop.eup %1782  ;;  %1792 = vrcp.f32 %v267_v12  ;;  %v268_v59 = vadd.f32 1.0, %v1781_v57  ;;  %v358_v12 = vpop.permute.xlu0 %357 }
 0x114   :  { %v1785_v25 = vpop.eup %1784  ;;  %1794 = vrcp.f32 %v269_v55  ;;  %v270_v10 = vadd.f32 1.0, %v1783_v54 }
 0x115   :  { %v1787_v32 = vpop.eup %1786  ;;  %1796 = vrcp.f32 %v268_v59  ;;  %v271_v33 = vadd.f32 1.0, %v1785_v25 }
 0x116   :  { %v352_v5 = vpop.permute.xlu1 %351  ;;  %v1789_v53 = vpop.eup %1788  ;;  %1798 = vrcp.f32 %v270_v10  ;;  %v273_v63 = vadd.f32 1.0, %v1787_v32 }
 0x117   :  { %v2308_v41 = vmul.f32 0.0, %v352_v5  ;;  %v360_v52 = vsel %vm359_vm2, %v352_v5, %v354_v56  ;;  %v1791_v38 = vpop.eup %1790  ;;  %1800 = vrcp.f32 %v271_v33  ;;  %v272_v51 = vadd.f32 1.0, %v1789_v53 }
 0x118   :  { %1802 = vrcp.f32 %v273_v63  ;;  %v274_v57 = vadd.f32 1.0, %v1791_v38  ;;  %v2323_v38 = vsel %vm436_vm3, %v2168_v11, %v2162_v6  ;;  %v1281_v11 = vsel %vm1278_vm4, %v2287_v45, %v1277_v14 }
 0x119   :  { %3004 = vst [vmem:[#allocation27_spill] sm:$0xff] %v2308_v41  ;;  %v2313_v55 = vmul.f32 %v2305_v18, %v2308_v41  ;;  %1804 = vrcp.f32 %v272_v51 }
 0x11a   :  { %v356_v54 = vpop.permute.xlu1 %355  ;;  %1806 = vrcp.f32 %v274_v57 }
 0x11b   :  { %3005 = vst [vmem:[#allocation28_spill] sm:$0xff] %v2313_v55  ;;  %v361_v10 = vsel %vm359_vm2, %v354_v56, %v356_v54  ;;  %v362_v32 = vsel %vm359_vm2, %v356_v54, %v358_v12  ;;  %v1279_v56 = vsel %vm1278_vm4, %v2260_v1, %v2293_v8  ;;  %v2368_v55 = vsel %vm436_vm3, %v2162_v6, %v2175_v19 }
 0x11d   :  { %v1793_v5 = vpop.eup %1792 }
 0x11e   :  { %v1795_v59 = vpop.eup %1794  ;;  %v2318_v33 = vmul.f32 %v1793_v5, %v2262_v16  ;;  %v1280_v16 = vsel %vm1278_vm4, %v2293_v8, %v2287_v45  ;;  %v1157_v45 = vsel %vm1154_vm6, %v2254_v62, %v2282_v36 }
 0x11f   :  { %v1797_v63 = vpop.eup %1796  ;;  %v2326_v25 = vmul.f32 %v1795_v59, %v2264_v27 }
 0x120   :  { %v1799_v53 = vpop.eup %1798  ;;  %v2332_v51 = vmul.f32 %v1797_v63, %v2266_v28  ;;  %v2340_v57 = vmul.f32 %v360_v52, %v2318_v33  ;;  %v446_v59 = vmul.f32 %v2323_v38, %v2318_v33 }
 0x121   :  { %v1801_v27 = vpop.eup %1800  ;;  %v2343_v54 = vmul.f32 %v1799_v53, %v2271_v50  ;;  %v2346_v5 = vmul.f32 %v1280_v16, %v2326_v25  ;;  %v2349_v28 = vmul.f32 %v362_v32, %v2326_v25 }
 0x122   :  { %3006 = vst [vmem:[#allocation29_spill] sm:$0xff] %v2340_v57  ;;  %v1803_v8 = vpop.eup %1802  ;;  %v2354_v63 = vmul.f32 %v1801_v27, %v2276_v60  ;;  %v2360_v50 = vmul.f32 %v1279_v56, %v2332_v51  ;;  %v2363_v14 = vmul.f32 %v361_v10, %v2332_v51  ;;  %v439_v60 = vsel %vm436_vm3, %v2175_v19, %v2164_v7 }
 0x123   :  { %3007 = vst [vmem:[#allocation30_spill] sm:$0xff] %v2349_v28  ;;  %v1805_v53 = vpop.eup %1804  ;;  %v2374_v27 = vmul.f32 %v1803_v8, %v2278_v9  ;;  %v2377_v36 = vmul.f32 %v1157_v45, %v2343_v54  ;;  %v2389_v41 = vmul.f32 %v358_v12, %v2343_v54 }
 0x124   :  { %3008 = vst [vmem:[#allocation31_spill] sm:$0xff] %v2363_v14  ;;  %v1807_v28 = vpop.eup %1806  ;;  %v2380_v57 = vmul.f32 %v1805_v53, %v2280_v48  ;;  %v2383_v14 = vmul.f32 %v1281_v11, %v2343_v54  ;;  %v2386_v6 = vmul.f32 %v360_v52, %v2354_v63  ;;  %v464_v48 = vmul.f32 %v2156_v2, %v446_v59 }
 0x125   :  { %3009 = vst [vmem:[#allocation32_spill] sm:$0xff] %v2389_v41  ;;  %v2392_v19 = vmul.f32 %v1807_v28, %v2285_v39  ;;  %v2395_v9 = vmul.f32 %v1280_v16, %v2374_v27  ;;  %v2398_v8 = vmul.f32 %v362_v32, %v2374_v27  ;;  %v447_v41 = vmul.f32 %v2368_v55, %v2332_v51 }
 0x126   :  { %v2402_v53 = vmul.f32 %v1279_v56, %v2380_v57  ;;  %v2405_v52 = vmul.f32 %v361_v10, %v2380_v57  ;;  %v448_v39 = vmul.f32 %v439_v60, %v2326_v25  ;;  %485 = vrot.lane.b32.xlu1 %v464_v48, %s1933_s10  ;;  %v561_v10 = vsel %vm560_vm5, %v2185_v24, %v2192_v29 }
 0x127   :  { %3010 = vst [vmem:[#allocation33_spill] sm:$0xff] %v2395_v9  ;;  %v2411_v28 = vmul.f32 %v1157_v45, %v2392_v19  ;;  %v2414_v16 = vmul.f32 %v1281_v11, %v2392_v19  ;;  %v2417_v32 = vmul.f32 %v358_v12, %v2392_v19  ;;  %v465_v56 = vmul.f32 %v2156_v2, %v447_v41 }
 0x128   :  { %v449_v59 = vmul.f32 %v2164_v7, %v2343_v54  ;;  %v466_v45 = vmul.f32 %v2156_v2, %v448_v39  ;;  %v570_v9 = vmul.f32 %v561_v10, %v2318_v33  ;;  %v562_v12 = vsel %vm560_vm5, %v2192_v29, %v2179_v20 }
 0x129   :  { %487 = vrot.lane.b32.xlu0 %v465_v56, %s1933_s10  ;;  %v563_v24 = vsel %vm560_vm5, %v2179_v20, %v2198_v31  ;;  %v571_v11 = vmul.f32 %v562_v12, %v2332_v51  ;;  %v684_v29 = vsel %vm503_vm7, %v2206_v35, %v2188_v26  ;;  %v686_v35 = vsel %vm503_vm7, %v2213_v40, %v2196_v30 }
 0x12a   :  { %489 = vrot.lane.b32.xlu1 %v466_v45, %s1933_s10  ;;  %v467_v41 = vmul.f32 %v2156_v2, %v449_v59  ;;  %v588_v48 = vmul.f32 %v2158_v3, %v570_v9  ;;  %v572_v39 = vmul.f32 %v563_v24, %v2326_v25  ;;  %v573_v2 = vmul.f32 %v2198_v31, %v2343_v54 }
 0x12b   :  { %v589_v56 = vmul.f32 %v2158_v3, %v571_v11  ;;  %v693_v59 = vmul.f32 %v684_v29, %v2318_v33  ;;  %v780_v9 = vsub.s32 4, %v2016_v4  ;;  %v685_v45 = vsel %vm503_vm7, %v2188_v26, %v2213_v40 }
 0x12c   :  { %v590_v20 = vmul.f32 %v2158_v3, %v572_v39  ;;  %v694_v11 = vmul.f32 %v685_v45, %v2332_v51  ;;  %v695_v4 = vmul.f32 %v686_v35, %v2326_v25  ;;  %v2470_v26 = vmul.f32 %v439_v60, %v2374_v27 }
 0x12d   :  { %491 = vrot.lane.b32.xlu0 %v467_v41, %s1933_s10  ;;  %v591_v41 = vmul.f32 %v2158_v3, %v573_v2  ;;  %v781_v39 = vrot.slane %v2055_v17, %v780_v9  ;;  %v2473_v40 = vmul.f32 %v561_v10, %v2354_v63  ;;  %v2477_v3 = vmul.f32 %v563_v24, %v2374_v27 }
 0x12e   :  { %609 = vrot.lane.b32.xlu1 %v588_v48, %s1944_s3  ;;  %v711_v48 = vmul.f32 %v2181_v22, %v693_v59  ;;  %v712_v2 = vmul.f32 %v2181_v22, %v694_v11  ;;  %v696_v17 = vmul.f32 %v2196_v30, %v2343_v54  ;;  %v789_v59 = vrot.slane %v2066_v21, %v780_v9 }
 0x12f   :  { %v794_v60 = vmul.f32 %v781_v39, %v2318_v33  ;;  %v2487_v10 = vmul.f32 %v684_v29, %v2354_v63  ;;  %v2491_v24 = vmul.f32 %v686_v35, %v2374_v27 }
 0x130   :  { %v2502_v11 = vmul.f32 %v789_v59, %v2374_v27  ;;  %v714_v21 = vmul.f32 %v2181_v22, %v696_v17  ;;  %v2532_v17 = vsel %vm906_vm8, %v2204_v34, %v2229_v47 }
 0x131   :  { %611 = vrot.lane.b32.xlu0 %v589_v56, %s1944_s3  ;;  %v2466_v56 = vmul.f32 %v2323_v38, %v2354_v63  ;;  %v785_v38 = vrot.slane %v2035_v13, %v780_v9  ;;  %v2498_v13 = vmul.f32 %v2368_v55, %v2380_v57  ;;  %v810_v35 = vmul.f32 %v2183_v23, %v794_v60 }
 0x132   :  { %613 = vrot.lane.b32.xlu1 %v590_v20, %s1944_s3  ;;  %v713_v20 = vmul.f32 %v2181_v22, %v695_v4  ;;  %v796_v4 = vmul.f32 %v789_v59, %v2326_v25  ;;  %v2514_v55 = vmul.f32 %v685_v45, %v2380_v57 }
 0x133   :  { %v795_v29 = vmul.f32 %v785_v38, %v2332_v51 }
 0x135   :  { %615 = vrot.lane.b32.xlu0 %v591_v41, %s1944_s3  ;;  %v2494_v41 = vmul.f32 %v781_v39, %v2354_v63  ;;  %v2510_v39 = vmul.f32 %v562_v12, %v2380_v57  ;;  %v811_v22 = vmul.f32 %v2183_v23, %v795_v29  ;;  %v2523_v12 = vmul.f32 %v785_v38, %v2380_v57 }
 0x136   :  { %732 = vrot.lane.b32.xlu1 %v711_v48, %s1929_s29  ;;  %v793_v48 = vrot.slane %v2043_v15, %v780_v9  ;;  %v812_v15 = vmul.f32 %v2183_v23, %v796_v4  ;;  %v915_v9 = vmul.f32 %v2204_v34, %v2318_v33  ;;  %v916_v38 = vmul.f32 %v2532_v17, %v2332_v51 }
 0x137   :  { %v2545_v29 = vmul.f32 %v2305_v18, %v2386_v6  ;;  %v1039_v4 = vmul.f32 %v2245_v58, %v2318_v33 }
 0x138   :  { %v2527_v45 = vmul.f32 %v793_v48, %v2392_v19  ;;  %v934_v6 = vmul.f32 %v2219_v42, %v916_v38  ;;  %v3011_v38 = vld [vmem:[#allocation24_spill] sm:$0xff] }
 0x139   :  { %734 = vrot.lane.b32.xlu0 %v712_v2, %s1929_s29  ;;  %v797_v2 = vmul.f32 %v793_v48, %v2343_v54  ;;  %v2549_v48 = vmul.f32 %v2305_v18, %v2405_v52 }
 0x13a   :  { %736 = vrot.lane.b32.xlu1 %v713_v20, %s1929_s29  ;;  %v908_v20 = vsel %vm906_vm8, %v2229_v47, %v2209_v37  ;;  %v2553_v47 = vmul.f32 %v2305_v18, %v2398_v8 }
 0x13b   :  { %v813_v60 = vmul.f32 %v2183_v23, %v797_v2  ;;  %v917_v59 = vmul.f32 %v908_v20, %v2326_v25  ;;  %v2558_v23 = vmul.f32 %v2305_v18, %v2417_v32  ;;  %v2575_v18 = vsel %vm1030_vm9, %v2245_v58, %v2221_v43 }
 0x13c   :  { %v1040_v32 = vmul.f32 %v2575_v18, %v2332_v51 }
 0x13d   :  { %738 = vrot.lane.b32.xlu0 %v714_v21, %s1929_s29  ;;  %v933_v21 = vmul.f32 %v2219_v42, %v915_v9  ;;  %v935_v52 = vmul.f32 %v2219_v42, %v917_v59  ;;  %v2601_v59 = vsel %vm1154_vm6, %v2258_v0, %v3011_v38 }
 0x13e   :  { %826 = vrot.lane.b32.xlu1 %v810_v35, %s1943_s2  ;;  %v2563_v35 = vsel %vm906_vm8, %v2209_v37, %v2233_v49  ;;  %v1032_v37 = vsel %vm1030_vm9, %v2221_v43, %v2252_v61  ;;  %v1058_v9 = vmul.f32 %v2223_v44, %v1040_v32 }
 0x13f   :  { %v918_v8 = vmul.f32 %v2563_v35, %v2343_v54  ;;  %v1041_v2 = vmul.f32 %v1032_v37, %v2326_v25 }
 0x141   :  { %828 = vrot.lane.b32.xlu0 %v811_v22, %s1943_s2  ;;  %v936_v49 = vmul.f32 %v2219_v42, %v918_v8  ;;  %v1057_v22 = vmul.f32 %v2223_v44, %v1039_v4  ;;  %v1059_v43 = vmul.f32 %v2223_v44, %v1041_v2 }
 0x142   :  { %830 = vrot.lane.b32.xlu1 %v812_v15, %s1943_s2  ;;  %v2588_v15 = vsel %vm1030_vm9, %v2252_v61, %v2227_v46  ;;  %v1156_v46 = vsel %vm1154_vm6, %v3011_v38, %v2254_v62  ;;  %v1164_v61 = vmul.f32 %v2601_v59, %v2332_v51  ;;  %v1287_v62 = vmul.f32 %v2260_v1, %v2318_v33 }
 0x143   :  { %v1042_v42 = vmul.f32 %v2588_v15, %v2343_v54 }
 0x145   :  { %832 = vrot.lane.b32.xlu0 %v813_v60, %s1943_s2  ;;  %v1163_v60 = vmul.f32 %v2258_v0, %v2318_v33  ;;  %v1060_v54 = vmul.f32 %v2223_v44, %v1042_v42 }
 0x146   :  { %953 = vrot.lane.b32.xlu1 %v933_v21, %s1945_s28  ;;  %v1165_v21 = vmul.f32 %v1156_v46, %v2326_v25  ;;  %v3013_v25 = vld [vmem:[#allocation23_spill] sm:$0xff] }
 0x147   :  { %v1305_v51 = vmul.f32 %v3013_v25, %v1287_v62  ;;  %v1307_v32 = vmul.f32 %v3013_v25, %v2346_v5  ;;  %v1308_v33 = vmul.f32 %v3013_v25, %v2383_v14  ;;  %v922_v5 = vmul.f32 %v908_v20, %v2374_v27  ;;  %v3017_v20 = vld [vmem:[#allocation20_spill] sm:$0xff]  ;;  %v2676_v62 = vpop.permute.xlu0 %493 }
 0x148   :  { %v1044_v14 = vmul.f32 %v2245_v58, %v2354_v63 }
 0x149   :  { %955 = vrot.lane.b32.xlu0 %v934_v6, %s1945_s28  ;;  %v3012_v6 = vld [vmem:[#allocation19_spill] sm:$0xff] }
 0x14a   :  { %957 = vrot.lane.b32.xlu1 %v935_v52, %s1945_s28  ;;  %v1181_v8 = vmul.f32 %v3012_v6, %v1163_v60  ;;  %v1182_v52 = vmul.f32 %v3012_v6, %v1164_v61  ;;  %v1183_v4 = vmul.f32 %v3012_v6, %v1165_v21  ;;  %v1184_v44 = vmul.f32 %v3012_v6, %v2377_v36  ;;  %v2661_v61 = vpop.permute.xlu1 %1376 }
 0x14b   :  { %v920_v36 = vmul.f32 %v2204_v34, %v2354_v63  ;;  %v1062_v60 = vmul.f32 %v3017_v20, %v1044_v14  ;;  %v1170_v6 = vmul.f32 %v1156_v46, %v2374_v27  ;;  %v1169_v14 = vmul.f32 %v2601_v59, %v2380_v57  ;;  %v3021_v59 = vld [vmem:[#allocation27_spill] sm:$0xff] }
 0x14d   :  { %959 = vrot.lane.b32.xlu0 %v936_v49, %s1945_s28  ;;  %v1306_v49 = vmul.f32 %v3013_v25, %v2360_v50  ;;  %v3015_v50 = vld [vmem:[#allocation17_spill] sm:$0xff]  ;;  %v2690_v25 = vpop.permute.xlu0 %617 }
 0x14e   :  { %1077 = vrot.lane.b32.xlu1 %v1057_v22, %s1946_s30  ;;  %v3014_v22 = vld [vmem:[#allocation14_spill] sm:$0xff]  ;;  %v940_v34 = vmul.f32 %v3015_v50, %v922_v5  ;;  %v701_v5 = vmul.f32 %v2196_v30, %v2392_v19 }
 0x14f   :  { %v469_v2 = vmul.f32 %v3014_v22, %v2466_v56  ;;  %v471_v42 = vmul.f32 %v3014_v22, %v2470_v26  ;;  %v3016_v56 = vld [vmem:[#allocation15_spill] sm:$0xff]  ;;  %v1046_v26 = vmul.f32 %v1032_v37, %v2374_v27  ;;  %v3019_v37 = vld [vmem:[#allocation22_spill] sm:$0xff]  ;;  %v470_v27 = vmul.f32 %v3014_v22, %v2498_v13 }
 0x150   :  { %v595_v38 = vmul.f32 %v3016_v56, %v2477_v3 }
 0x151   :  { %1079 = vrot.lane.b32.xlu0 %v1058_v9, %s1946_s30  ;;  %v938_v9 = vmul.f32 %v3015_v50, %v920_v36  ;;  %v1064_v58 = vmul.f32 %v3017_v20, %v1046_v26 }
 0x152   :  { %1081 = vrot.lane.b32.xlu1 %v1059_v43, %s1946_s30  ;;  %v593_v43 = vmul.f32 %v3016_v56, %v2473_v40  ;;  %v1168_v40 = vmul.f32 %v2258_v0, %v2354_v63  ;;  %v1188_v0 = vmul.f32 %v3019_v37, %v1170_v6 }
 0x154   :  { %v1186_v3 = vmul.f32 %v3019_v37, %v1168_v40 }
 0x155   :  { %1083 = vrot.lane.b32.xlu0 %v1060_v54, %s1946_s30  ;;  %v3018_v54 = vld [vmem:[#allocation16_spill] sm:$0xff] }
 0x156   :  { %1201 = vrot.lane.b32.xlu1 %v1181_v8, %s1947_s8  ;;  %v716_v21 = vmul.f32 %v3018_v54, %v2487_v10  ;;  %v718_v8 = vmul.f32 %v3018_v54, %v2491_v24  ;;  %v3020_v10 = vld [vmem:[#allocation18_spill] sm:$0xff]  ;;  %v454_v24 = vmul.f32 %v2164_v7, %v2392_v19  ;;  %v923_v7 = vmul.f32 %v2563_v35, %v2392_v19 }
 0x157   :  { %v816_v46 = vmul.f32 %v3020_v10, %v2502_v11 }
 0x158   :  { %v941_v36 = vmul.f32 %v3015_v50, %v923_v7 }
 0x159   :  { %1203 = vrot.lane.b32.xlu0 %v1182_v52, %s1947_s8  ;;  %v484_v52 = vpop.permute.xlu1 %483 }
 0x15a   :  { %1205 = vrot.lane.b32.xlu1 %v1183_v4, %s1947_s8  ;;  %v814_v4 = vmul.f32 %v3020_v10, %v2494_v41  ;;  %v921_v41 = vmul.f32 %v2532_v17, %v2380_v57  ;;  %v594_v17 = vmul.f32 %v3016_v56, %v2510_v39 }
 0x15c   :  { %v939_v13 = vmul.f32 %v3015_v50, %v921_v41  ;;  %v717_v50 = vmul.f32 %v3018_v54, %v2514_v55  ;;  %v1187_v55 = vmul.f32 %v3019_v37, %v1169_v14 }
 0x15d   :  { %1207 = vrot.lane.b32.xlu0 %v1184_v44, %s1947_s8  ;;  %v2679_v44 = vpop.permute.xlu1 %607 }
 0x15e   :  { %1325 = vrot.lane.b32.xlu1 %v1305_v51, %s1948_s9 }
 0x161   :  { %1327 = vrot.lane.b32.xlu0 %v1306_v49, %s1948_s9  ;;  %v2693_v51 = vpop.permute.xlu1 %730  ;;  %v472_v49 = vmul.f32 %v3014_v22, %v454_v24  ;;  %v1045_v22 = vmul.f32 %v2575_v18, %v2380_v57  ;;  %v815_v57 = vmul.f32 %v3020_v10, %v2523_v12  ;;  %v1292_v12 = vmul.f32 %v2260_v1, %v2354_v63 }
 0x162   :  { %1329 = vrot.lane.b32.xlu1 %v1307_v32, %s1948_s9  ;;  %v2700_v32 = vpop.permute.xlu0 %740 }
 0x163   :  { %v1063_v39 = vmul.f32 %v3017_v20, %v1045_v22 }
 0x165   :  { %1331 = vrot.lane.b32.xlu0 %v1308_v33, %s1948_s9  ;;  %v2703_v11 = vpop.permute.xlu1 %961  ;;  %v578_v33 = vmul.f32 %v2198_v31, %v2392_v19  ;;  %v1047_v31 = vmul.f32 %v2588_v15, %v2392_v19  ;;  %v1189_v19 = vmul.f32 %v3019_v37, %v2411_v28  ;;  %v3023_v28 = vld [vmem:[#allocation21_spill] sm:$0xff] }
 0x166   :  { %495 = vrot.lane.b32.xlu1 %v469_v2, %s1933_s10  ;;  %v2713_v35 = vpop.permute.xlu0 %971  ;;  %v1310_v6 = vmul.f32 %v3023_v28, %v1292_v12  ;;  %v3028_v12 = vld [vmem:[#allocation30_spill] sm:$0xff] }
 0x167   :  { %v596_v2 = vmul.f32 %v3016_v56, %v578_v33  ;;  %v719_v56 = vmul.f32 %v3018_v54, %v701_v5  ;;  %v817_v54 = vmul.f32 %v3020_v10, %v2527_v45 }
 0x169   :  { %963 = vrot.lane.b32.xlu0 %v938_v9, %s1945_s28  ;;  %v2718_v9 = vpop.permute.xlu1 %1085 }
 0x16a   :  { %499 = vrot.lane.b32.xlu1 %v471_v42, %s1933_s10  ;;  %v2725_v18 = vpop.permute.xlu0 %1095 }
 0x16d   :  { %967 = vrot.lane.b32.xlu0 %v940_v34, %s1945_s28  ;;  %v1065_v34 = vmul.f32 %v3017_v20, %v1047_v31  ;;  %v3022_v20 = vld [vmem:[#allocation25_spill] sm:$0xff] }
 0x16e   :  { %619 = vrot.lane.b32.xlu1 %v593_v43, %s1944_s3 }
 0x171   :  { %1087 = vrot.lane.b32.xlu0 %v1062_v60, %s1946_s30  ;;  %v388_v60 = vmul.f32 %v3022_v20, %v3021_v59 }
 0x172   :  { %623 = vrot.lane.b32.xlu1 %v595_v38, %s1944_s3 }
 0x175   :  { %1091 = vrot.lane.b32.xlu0 %v1064_v58, %s1946_s30 }
 0x176   :  { %742 = vrot.lane.b32.xlu1 %v716_v21, %s1929_s29  ;;  %v2738_v15 = vpop.permute.xlu0 %1381  ;;  %v1311_v21 = vmul.f32 %v3023_v28, %v2402_v53  ;;  %v3024_v53 = vld [vmem:[#allocation33_spill] sm:$0xff] }
 0x177   :  { %v1312_v45 = vmul.f32 %v3023_v28, %v3024_v53 }
 0x179   :  { %1211 = vrot.lane.b32.xlu0 %v1186_v3, %s1947_s8 }
 0x17a   :  { %746 = vrot.lane.b32.xlu1 %v718_v8, %s1929_s29  ;;  %v1313_v8 = vmul.f32 %v3023_v28, %v2414_v16 }
 0x17d   :  { %1215 = vrot.lane.b32.xlu0 %v1188_v0, %s1947_s8  ;;  %v2731_v42 = vpop.permute.xlu1 %1209 }
 0x17e   :  { %834 = vrot.lane.b32.xlu1 %v814_v4, %s1943_s2  ;;  %v2746_v30 = vpop.permute.xlu0 %1219  ;;  %v3025_v4 = vld [vmem:[#allocation26_spill] sm:$0xff] }
 0x181   :  { %497 = vrot.lane.b32.xlu0 %v470_v27, %s1933_s10  ;;  %v1314_v27 = vmul.f32 %v3023_v28, %v3025_v4  ;;  %v391_v28 = vmul.f32 %v3022_v20, %v3028_v12 }
 0x182   :  { %838 = vrot.lane.b32.xlu1 %v816_v46, %s1943_s2 }
 0x185   :  { %501 = vrot.lane.b32.xlu0 %v472_v49, %s1933_s10  ;;  %v2741_v43 = vpop.permute.xlu1 %1333 }
 0x186   :  { %965 = vrot.lane.b32.xlu1 %v939_v13, %s1945_s28 }
 0x189   :  { %621 = vrot.lane.b32.xlu0 %v594_v17, %s1944_s3 }
 0x18a   :  { %969 = vrot.lane.b32.xlu1 %v941_v36, %s1945_s28 }
 0x18d   :  { %625 = vrot.lane.b32.xlu0 %v596_v2, %s1944_s3 }
 0x18e   :  { %1089 = vrot.lane.b32.xlu1 %v1063_v39, %s1946_s30 }
 0x191   :  { %744 = vrot.lane.b32.xlu0 %v717_v50, %s1929_s29 }
 0x192   :  { %1093 = vrot.lane.b32.xlu1 %v1065_v34, %s1946_s30 }
 0x195   :  { %748 = vrot.lane.b32.xlu0 %v719_v56, %s1929_s29 }
 0x196   :  { %1213 = vrot.lane.b32.xlu1 %v1187_v55, %s1947_s8 }
 0x198   :  { %v486_v26 = vpop.permute.xlu1 %485 }
 0x199   :  { %836 = vrot.lane.b32.xlu0 %v815_v57, %s1943_s2  ;;  %v504_v38 = vsel %vm503_vm7, %v484_v52, %v486_v26  ;;  %v3026_v57 = vld [vmem:[#allocation29_spill] sm:$0xff] }
 0x19a   :  { %v522_v58 = vadd.f32 %v504_v38, %v388_v60  ;;  %1217 = vrot.lane.b32.xlu1 %v1189_v19, %s1947_s8  ;;  %v389_v19 = vmul.f32 %v3022_v20, %v3026_v57  ;;  %v3027_v60 = vld [vmem:[#allocation31_spill] sm:$0xff] }
 0x19b   :  { %v488_v40 = vpop.permute.xlu0 %487  ;;  %v390_v38 = vmul.f32 %v3022_v20, %v3027_v60 }
 0x19c   :  { %v490_v37 = vpop.permute.xlu1 %489  ;;  %v505_v55 = vsel %vm503_vm7, %v486_v26, %v488_v40 }
 0x19d   :  { %840 = vrot.lane.b32.xlu0 %v817_v54, %s1943_s2  ;;  %v506_v59 = vsel %vm503_vm7, %v488_v40, %v490_v37  ;;  %v523_v54 = vadd.f32 %v505_v55, %v389_v19 }
 0x19e   :  { %1337 = vrot.lane.b32.xlu1 %v1311_v21, %s1948_s9  ;;  %v3029_v21 = vld [vmem:[#allocation32_spill] sm:$0xff] }
 0x19f   :  { %v492_v3 = vpop.permute.xlu0 %491 }
 0x1a0   :  { %v610_v52 = vpop.permute.xlu1 %609 }
 0x1a1   :  { %1335 = vrot.lane.b32.xlu0 %v1310_v6, %s1948_s9  ;;  %v628_v1 = vsel %vm627_vm10, %v2679_v44, %v610_v52  ;;  %v392_v6 = vmul.f32 %v3022_v20, %v3029_v21 }
 0x1a2   :  { %v646_v63 = vadd.f32 %v628_v1, %v522_v58  ;;  %1341 = vrot.lane.b32.xlu1 %v1313_v8, %s1948_s9  ;;  %v524_v1 = vadd.f32 %v506_v59, %v390_v38 }
 0x1a3   :  { %v612_v0 = vpop.permute.xlu0 %611 }
 0x1a4   :  { %v614_v10 = vpop.permute.xlu1 %613  ;;  %v629_v58 = vsel %vm627_vm10, %v610_v52, %v612_v0 }
 0x1a5   :  { %1339 = vrot.lane.b32.xlu0 %v1312_v45, %s1948_s9  ;;  %v630_v26 = vsel %vm627_vm10, %v612_v0, %v614_v10  ;;  %v526_v45 = vadd.f32 %v492_v3, %v392_v6  ;;  %v647_v4 = vadd.f32 %v629_v58, %v523_v54 }
 0x1a7   :  { %v616_v16 = vpop.permute.xlu0 %615 }
 0x1a8   :  { %v733_v24 = vpop.permute.xlu1 %732 }
 0x1a9   :  { %1343 = vrot.lane.b32.xlu0 %v1314_v27, %s1948_s9  ;;  %v750_v44 = vsel %vm436_vm3, %v2693_v51, %v733_v24 }
 0x1aa   :  { %v768_v46 = vadd.f32 %v750_v44, %v646_v63  ;;  %v507_v63 = vsel %vm503_vm7, %v490_v37, %v492_v3  ;;  %v648_v44 = vadd.f32 %v630_v26, %v524_v1 }
 0x1ab   :  { %v735_v41 = vpop.permute.xlu0 %734  ;;  %v525_v0 = vadd.f32 %v507_v63, %v391_v28 }
 0x1ac   :  { %v737_v49 = vpop.permute.xlu1 %736  ;;  %v751_v40 = vsel %vm436_vm3, %v733_v24, %v735_v41 }
 0x1ad   :  { %v752_v52 = vsel %vm436_vm3, %v735_v41, %v737_v49 }
 0x1ae   :  { %v770_v24 = vadd.f32 %v752_v52, %v648_v44 }
 0x1af   :  { %v739_v13 = vpop.permute.xlu0 %738 }
 0x1b0   :  { %v827_v7 = vpop.permute.xlu1 %826  ;;  %v753_v57 = vsel %vm436_vm3, %v737_v49, %v739_v13 }
 0x1b1   :  { %v858_v17 = vadd.f32 %v827_v7, %v768_v46  ;;  %v631_v46 = vsel %vm627_vm10, %v614_v10, %v616_v16 }
 0x1b3   :  { %v829_v33 = vpop.permute.xlu0 %828 }
 0x1b4   :  { %v831_v36 = vpop.permute.xlu1 %830  ;;  %v842_v20 = vsel %vm359_vm2, %v827_v7, %v829_v33 }
 0x1b5   :  { %v843_v37 = vsel %vm359_vm2, %v829_v33, %v831_v36 }
 0x1b6   :  { %v860_v7 = vadd.f32 %v843_v37, %v770_v24 }
 0x1b7   :  { %v833_v22 = vpop.permute.xlu0 %832 }
 0x1b8   :  { %v954_v2 = vpop.permute.xlu1 %953  ;;  %v844_v60 = vsel %vm359_vm2, %v831_v36, %v833_v22 }
 0x1b9   :  { %v992_v39 = vadd.f32 %v954_v2, %v858_v17  ;;  %v650_v17 = vadd.f32 %v616_v16, %v526_v45 }
 0x1bb   :  { %v956_v31 = vpop.permute.xlu0 %955  ;;  %v772_v19 = vadd.f32 %v739_v13, %v650_v17 }
 0x1bc   :  { %v958_v50 = vpop.permute.xlu1 %957  ;;  %v974_v3 = vsel %vm973_vm11, %v954_v2, %v956_v31 }
 0x1bd   :  { %v975_v10 = vsel %vm973_vm11, %v956_v31, %v958_v50  ;;  %v862_v38 = vadd.f32 %v833_v22, %v772_v19 }
 0x1be   :  { %v994_v2 = vadd.f32 %v975_v10, %v860_v7 }
 0x1bf   :  { %v960_v5 = vpop.permute.xlu0 %959 }
 0x1c0   :  { %v1078_v34 = vpop.permute.xlu1 %1077  ;;  %v976_v12 = vsel %vm973_vm11, %v958_v50, %v960_v5  ;;  %v977_v13 = vsel %vm973_vm11, %v960_v5, %v2703_v11 }
 0x1c1   :  { %v1116_v14 = vadd.f32 %v1078_v34, %v992_v39  ;;  %v769_v39 = vadd.f32 %v751_v40, %v647_v4  ;;  %v996_v50 = vadd.f32 %v977_v13, %v862_v38 }
 0x1c3   :  { %v1080_v56 = vpop.permute.xlu0 %1079  ;;  %v859_v59 = vadd.f32 %v842_v20, %v769_v39 }
 0x1c4   :  { %v1082_v51 = vpop.permute.xlu1 %1081  ;;  %v1098_v16 = vsel %vm1097_vm12, %v1078_v34, %v1080_v56 }
 0x1c5   :  { %v993_v58 = vadd.f32 %v974_v3, %v859_v59  ;;  %v1099_v49 = vsel %vm1097_vm12, %v1080_v56, %v1082_v51 }
 0x1c6   :  { %v1118_v22 = vadd.f32 %v1099_v49, %v994_v2 }
 0x1c7   :  { %v1084_v8 = vpop.permute.xlu0 %1083  ;;  %v1117_v36 = vadd.f32 %v1098_v16, %v993_v58 }
 0x1c8   :  { %v1202_v53 = vpop.permute.xlu1 %1201  ;;  %v1100_v26 = vsel %vm1097_vm12, %v1082_v51, %v1084_v8  ;;  %v1101_v56 = vsel %vm1097_vm12, %v1084_v8, %v2718_v9 }
 0x1c9   :  { %v1240_v27 = vadd.f32 %v1202_v53, %v1116_v14  ;;  %v649_v14 = vadd.f32 %v631_v46, %v525_v0 }
 0x1cb   :  { %v1204_v55 = vpop.permute.xlu0 %1203  ;;  %v771_v33 = vadd.f32 %v753_v57, %v649_v14 }
 0x1cc   :  { %v1206_v41 = vpop.permute.xlu1 %1205  ;;  %v1222_v31 = vsel %vm1221_vm13, %v1202_v53, %v1204_v55 }
 0x1cd   :  { %v861_v21 = vadd.f32 %v844_v60, %v771_v33  ;;  %v1223_v34 = vsel %vm1221_vm13, %v1204_v55, %v1206_v41  ;;  %v1241_v63 = vadd.f32 %v1222_v31, %v1117_v36 }
 0x1ce   :  { %v1242_v11 = vadd.f32 %v1223_v34, %v1118_v22 }
 0x1cf   :  { %v1208_v54 = vpop.permute.xlu0 %1207  ;;  %v995_v1 = vadd.f32 %v976_v12, %v861_v21 }
 0x1d0   :  { %v1326_v28 = vpop.permute.xlu1 %1325  ;;  %v1224_v5 = vsel %vm1221_vm13, %v1206_v41, %v1208_v54  ;;  %v1225_v53 = vsel %vm1221_vm13, %v1208_v54, %v2731_v42 }
 0x1d1   :  { %v2809_v6 = vadd.f32 %v1326_v28, %v1240_v27  ;;  %v1119_v52 = vadd.f32 %v1100_v26, %v995_v1  ;;  %v1120_v27 = vadd.f32 %v1101_v56, %v996_v50 }
 0x1d3   :  { %v1328_v40 = vpop.permute.xlu0 %1327  ;;  %v1243_v9 = vadd.f32 %v1224_v5, %v1119_v52  ;;  %v1244_v8 = vadd.f32 %v1225_v53, %v1120_v27 }
 0x1d4   :  { %v1346_v45 = vsel %vm1345_vm14, %v1326_v28, %v1328_v40  ;;  %v1330_v4 = vpop.permute.xlu1 %1329 }
 0x1d5   :  { %v1365_v44 = vadd.f32 %v1346_v45, %v1241_v63  ;;  %v1347_v51 = vsel %vm1345_vm14, %v1328_v40, %v1330_v4 }
 0x1d6   :  { %v1366_v46 = vadd.f32 %v1347_v51, %v1242_v11 }
 0x1d7   :  { %v1385_v20 = vadd.f32 %v2661_v61, %v1365_v44  ;;  %v1332_v0 = vpop.permute.xlu0 %1331 }
 0x1d8   :  { %v1386_v17 = vadd.f32 %v2661_v61, %v1366_v46  ;;  %v1348_v39 = vsel %vm1345_vm14, %v1330_v4, %v1332_v0  ;;  %v1349_v42 = vsel %vm1345_vm14, %v1332_v0, %v2741_v43  ;;  %v2824_v37 = vpop.permute.xlu1 %495 }
 0x1d9   :  { %v1395_v55 = vsub.f32 0.0, %v1385_v20  ;;  %v1367_v24 = vadd.f32 %v1348_v39, %v1243_v9  ;;  %v1368_v57 = vadd.f32 %v1349_v42, %v1244_v8  ;;  %v508_v39 = vsel %vm503_vm7, %v2676_v62, %v2824_v37 }
 0x1da   :  { %v1396_v3 = vsub.f32 0.0, %v1386_v17 }
 0x1db   :  { %v1406_v41 = vmul.f32 1.442695, %v1395_v55  ;;  %v1387_v14 = vadd.f32 %v2661_v61, %v1367_v24  ;;  %v1388_v19 = vadd.f32 %v2661_v61, %v1368_v57  ;;  %v2828_v59 = vpop.permute.xlu0 %963 }
 0x1dc   :  { %v1408_v10 = vmul.f32 1.442695, %v1396_v3  ;;  %v2830_v7 = vpop.permute.xlu1 %499 }
 0x1dd   :  { %1808 = vpow2.f32 %v1406_v41  ;;  %v1397_v60 = vsub.f32 0.0, %v1387_v14  ;;  %v1398_v16 = vsub.f32 0.0, %v1388_v19 }
 0x1de   :  { %1810 = vpow2.f32 %v1408_v10 }
 0x1df   :  { %v1410_v43 = vmul.f32 1.442695, %v1397_v60  ;;  %v1412_v33 = vmul.f32 1.442695, %v1398_v16  ;;  %v2832_v38 = vpop.permute.xlu0 %967 }
 0x1e0   :  { %v620_v58 = vpop.permute.xlu1 %619 }
 0x1e1   :  { %1812 = vpow2.f32 %v1410_v43 }
 0x1e2   :  { %1814 = vpow2.f32 %v1412_v33 }
 0x1e3   :  { %v2834_v49 = vpop.permute.xlu0 %1087 }
 0x1e4   :  { %v2836_v54 = vpop.permute.xlu1 %623 }
 0x1e7   :  { %v1809_v2 = vpop.eup %1808  ;;  %v2838_v12 = vpop.permute.xlu0 %1091 }
 0x1e8   :  { %v1811_v13 = vpop.eup %1810  ;;  %v1425_v31 = vadd.f32 1.0, %v1809_v2  ;;  %v743_v28 = vpop.permute.xlu1 %742 }
 0x1e9   :  { %v1426_v21 = vadd.f32 1.0, %v1811_v13  ;;  %v754_v3 = vsel %vm436_vm3, %v2700_v32, %v743_v28  ;;  %v2867_v32 = vadd.f32 %v2661_v61, %v2809_v6 }
 0x1ea   :  { %1816 = vrcp.f32 %v1425_v31 }
 0x1eb   :  { %v1813_v36 = vpop.eup %1812  ;;  %1818 = vrcp.f32 %v1426_v21  ;;  %v2840_v34 = vpop.permute.xlu0 %1211 }
 0x1ec   :  { %v1815_v22 = vpop.eup %1814  ;;  %v1427_v26 = vadd.f32 1.0, %v1813_v36  ;;  %v747_v56 = vpop.permute.xlu1 %746 }
 0x1ed   :  { %v1428_v1 = vadd.f32 1.0, %v1815_v22 }
 0x1ee   :  { %1820 = vrcp.f32 %v1427_v26 }
 0x1ef   :  { %1822 = vrcp.f32 %v1428_v1  ;;  %v2842_v50 = vpop.permute.xlu0 %1215 }
 0x1f0   :  { %v835_v63 = vpop.permute.xlu1 %834 }
 0x1f3   :  { %v498_v40 = vpop.permute.xlu0 %497 }
 0x1f4   :  { %v1817_v11 = vpop.eup %1816  ;;  %v2844_v5 = vpop.permute.xlu1 %838  ;;  %v509_v62 = vsel %vm503_vm7, %v2824_v37, %v498_v40  ;;  %v510_v60 = vsel %vm503_vm7, %v498_v40, %v2830_v7 }
 0x1f5   :  { %v1819_v53 = vpop.eup %1818  ;;  %v1437_v45 = vmul.f32 %v1817_v11, %v1385_v20  ;;  %v632_v20 = vsel %vm627_vm10, %v2690_v25, %v620_v58  ;;  %v528_v2 = vadd.f32 %v509_v62, %v2545_v29  ;;  %v529_v13 = vadd.f32 %v510_v60, %v2549_v48 }
 0x1f6   :  { %v1439_v4 = vmul.f32 %v1819_v53, %v1386_v17  ;;  %v3030_v17 = vld [vmem:[#allocation28_spill] sm:$0xff]  ;;  %v1394_v48 = vsub.f32 0.0, %v2867_v32 }
 0x1f7   :  { %v502_v52 = vpop.permute.xlu0 %501  ;;  %v527_v24 = vadd.f32 %v508_v39, %v3030_v17 }
 0x1f8   :  { %v1821_v27 = vpop.eup %1820  ;;  %v966_v44 = vpop.permute.xlu1 %965  ;;  %v1749_v51 = vpack.i.bf16 %v1439_v4, %v1437_v45  ;;  %v511_v31 = vsel %vm503_vm7, %v2830_v7, %v502_v52  ;;  %v531_v61 = vadd.f32 %v502_v52, %v2558_v23 }
 0x1f9   :  { %v1823_v46 = vpop.eup %1822  ;;  %v1441_v9 = vmul.f32 %v1821_v27, %v1387_v14  ;;  %v651_v14 = vadd.f32 %v632_v20, %v527_v24  ;;  %v530_v6 = vadd.f32 %v511_v31, %v2553_v47  ;;  %v978_v47 = vsel %vm973_vm11, %v2828_v59, %v966_v44 }
 0x1fa   :  { %v1443_v8 = vmul.f32 %v1823_v46, %v1388_v19  ;;  %1750 = vrot.lane.b32.xlu1 %v1749_v51, %s1942_s19  ;;  %v979_v46 = vsel %vm973_vm11, %v966_v44, %v2832_v38  ;;  %v1404_v24 = vmul.f32 1.442695, %v1394_v48 }
 0x1fb   :  { %v622_v0 = vpop.permute.xlu0 %621  ;;  %v773_v19 = vadd.f32 %v754_v3, %v651_v14 }
 0x1fc   :  { %v1754_v42 = vpack.i.bf16 %v1443_v8, %v1441_v9  ;;  %v970_v55 = vpop.permute.xlu1 %969  ;;  %v633_v43 = vsel %vm627_vm10, %v620_v58, %v622_v0  ;;  %v634_v33 = vsel %vm627_vm10, %v622_v0, %v2836_v54  ;;  %1824 = vpow2.f32 %v1404_v24 }
 0x1fd   :  { %v863_v25 = vadd.f32 %v835_v63, %v773_v19  ;;  %v652_v26 = vadd.f32 %v633_v43, %v528_v2  ;;  %v653_v1 = vadd.f32 %v634_v33, %v529_v13  ;;  %v980_v44 = vsel %vm973_vm11, %v2832_v38, %v970_v55 }
 0x1fe   :  { %1755 = vrot.lane.b32.xlu0 %v1754_v42, %s1942_s19  ;;  %v981_v14 = vsel %vm973_vm11, %v970_v55, %v2713_v35 }
 0x1ff   :  { %v626_v57 = vpop.permute.xlu0 %625  ;;  %v997_v22 = vadd.f32 %v2828_v59, %v863_v25 }
 0x200   :  { %v1090_v41 = vpop.permute.xlu1 %1089  ;;  %v635_v29 = vsel %vm627_vm10, %v2836_v54, %v626_v57 }
 0x201   :  { %v654_v23 = vadd.f32 %v635_v29, %v530_v6  ;;  %v1121_v54 = vadd.f32 %v2834_v49, %v997_v22  ;;  %v1102_v39 = vsel %vm1097_vm12, %v2834_v49, %v1090_v41  ;;  %v1103_v19 = vsel %vm1097_vm12, %v1090_v41, %v2838_v12 }
 0x203   :  { %v745_v10 = vpop.permute.xlu0 %744  ;;  %v1245_v59 = vadd.f32 %v2840_v34, %v1121_v54 }
 0x204   :  { %v2860_v16 = vpop.permute.xlu1 %1093  ;;  %v755_v21 = vsel %vm436_vm3, %v743_v28, %v745_v10  ;;  %v756_v36 = vsel %vm436_vm3, %v745_v10, %v747_v56  ;;  %v655_v28 = vadd.f32 %v626_v57, %v531_v61 }
 0x205   :  { %v774_v40 = vadd.f32 %v755_v21, %v652_v26  ;;  %v775_v7 = vadd.f32 %v756_v36, %v653_v1  ;;  %v1104_v43 = vsel %vm1097_vm12, %v2838_v12, %v2860_v16 }
 0x207   :  { %v749_v37 = vpop.permute.xlu0 %748 }
 0x208   :  { %v1214_v58 = vpop.permute.xlu1 %1213  ;;  %v757_v53 = vsel %vm436_vm3, %v747_v56, %v749_v37  ;;  %v777_v9 = vadd.f32 %v749_v37, %v655_v28 }
 0x209   :  { %v776_v8 = vadd.f32 %v757_v53, %v654_v23  ;;  %v1226_v49 = vsel %vm1221_vm13, %v2840_v34, %v1214_v58  ;;  %v1105_v34 = vsel %vm1097_vm12, %v2860_v16, %v2725_v18  ;;  %v1227_v41 = vsel %vm1221_vm13, %v1214_v58, %v2842_v50  ;;  %v1825_v23 = vpop.eup %1824 }
 0x20a   :  { %v1424_v54 = vadd.f32 1.0, %v1825_v23 }
 0x20b   :  { %v837_v11 = vpop.permute.xlu0 %836 }
 0x20c   :  { %v845_v45 = vsel %vm359_vm2, %v835_v63, %v837_v11  ;;  %v846_v4 = vsel %vm359_vm2, %v837_v11, %v2844_v5  ;;  %v1218_v27 = vpop.permute.xlu1 %1217 }
 0x20d   :  { %v864_v52 = vadd.f32 %v845_v45, %v774_v40  ;;  %v865_v51 = vadd.f32 %v846_v4, %v775_v7  ;;  %v1228_v13 = vsel %vm1221_vm13, %v2842_v50, %v1218_v27  ;;  %v1229_v58 = vsel %vm1221_vm13, %v1218_v27, %v2746_v30 }
 0x20f   :  { %v998_v56 = vadd.f32 %v978_v47, %v864_v52  ;;  %v999_v0 = vadd.f32 %v979_v46, %v865_v51  ;;  %v841_v63 = vpop.permute.xlu0 %840 }
 0x210   :  { %v847_v42 = vsel %vm359_vm2, %v2844_v5, %v841_v63  ;;  %v867_v20 = vadd.f32 %v841_v63, %v777_v9  ;;  %v1338_v17 = vpop.permute.xlu1 %1337 }
 0x211   :  { %v866_v57 = vadd.f32 %v847_v42, %v776_v8  ;;  %v1122_v3 = vadd.f32 %v1102_v39, %v998_v56  ;;  %v1123_v25 = vadd.f32 %v1103_v19, %v999_v0 }
 0x212   :  { %v1001_v10 = vadd.f32 %v981_v14, %v867_v20 }
 0x213   :  { %v1000_v5 = vadd.f32 %v980_v44, %v866_v57  ;;  %v1336_v62 = vpop.permute.xlu0 %1335  ;;  %v1246_v60 = vadd.f32 %v1226_v49, %v1122_v3  ;;  %v1247_v36 = vadd.f32 %v1227_v41, %v1123_v25 }
 0x214   :  { %v1350_v38 = vsel %vm1345_vm14, %v1336_v62, %v1338_v17  ;;  %v1369_v33 = vadd.f32 %v1336_v62, %v1245_v59  ;;  %v1342_v55 = vpop.permute.xlu1 %1341  ;;  %v1125_v12 = vadd.f32 %v1105_v34, %v1001_v10 }
 0x215   :  { %v1370_v35 = vadd.f32 %v1350_v38, %v1246_v60  ;;  %v1124_v2 = vadd.f32 %v1104_v43, %v1000_v5 }
 0x216   :  { %v1389_v37 = vadd.f32 %v2738_v15, %v1369_v33  ;;  %v1249_v11 = vadd.f32 %v1229_v58, %v1125_v12 }
 0x217   :  { %v1390_v31 = vadd.f32 %v2738_v15, %v1370_v35  ;;  %v1340_v21 = vpop.permute.xlu0 %1339  ;;  %v1248_v22 = vadd.f32 %v1228_v13, %v1124_v2 }
 0x218   :  { %v1399_v26 = vsub.f32 0.0, %v1389_v37  ;;  %v1351_v1 = vsel %vm1345_vm14, %v1338_v17, %v1340_v21  ;;  %v1352_v61 = vsel %vm1345_vm14, %v1340_v21, %v1342_v55 }
 0x219   :  { %v1400_v18 = vsub.f32 0.0, %v1390_v31  ;;  %v1371_v16 = vadd.f32 %v1351_v1, %v1247_v36  ;;  %v1372_v29 = vadd.f32 %v1352_v61, %v1248_v22 }
 0x21a   :  { %v1414_v50 = vmul.f32 1.442695, %v1399_v26 }
 0x21b   :  { %v1416_v48 = vmul.f32 1.442695, %v1400_v18  ;;  %v1391_v6 = vadd.f32 %v2738_v15, %v1371_v16  ;;  %v1392_v40 = vadd.f32 %v2738_v15, %v1372_v29  ;;  %v1344_v7 = vpop.permute.xlu0 %1343 }
 0x21c   :  { %1826 = vpow2.f32 %v1414_v50  ;;  %v1353_v28 = vsel %vm1345_vm14, %v1342_v55, %v1344_v7 }
 0x21d   :  { %1828 = vpow2.f32 %v1416_v48  ;;  %v1401_v53 = vsub.f32 0.0, %v1391_v6  ;;  %v1402_v45 = vsub.f32 0.0, %v1392_v40  ;;  %v1373_v4 = vadd.f32 %v1353_v28, %v1249_v11  ;;  %v1454_v28 = vld [vmem:[%s2962_s4] sm:$0xf]  ;;  %s1949_s4 = smov [#allocation8]  }
 0x21e   :  { %s1673_s12 = sshll.u32 %s1949_s4, 4  ;;  %s1674_s12 = int_to_ptr.vmem [resolvable:$true] %s1673_s12 }
 0x21f   :  { %v1418_v52 = vmul.f32 1.442695, %v1401_v53  ;;  %v1420_v51 = vmul.f32 1.442695, %v1402_v45  ;;  %v1393_v30 = vadd.f32 %v2738_v15, %v1373_v4  ;;  %s1894_s13 = scalar_lea.vmem %s1674_s12, 256  ;;  %p1899_p3 = scmp.lt.s32.totalorder %s1674_s12, %s1674_s12 }
 0x220   :  { %p1895_p2 = scmp.ne.s32.totalorder %s1674_s12, %s1894_s13  ;;  %p1900_p4 = scmp.lt.s32.totalorder %s1894_s13, %s1894_s13 }
 0x221   :  { %1830 = vpow2.f32 %v1418_v52  ;;  %v1403_v27 = vsub.f32 0.0, %v1393_v30 }
 0x222   :  { %1832 = vpow2.f32 %v1420_v51  ;;  %p1901_p5 = por %p1900_p4, %p1899_p3 }
 0x223   :  { %v1422_v47 = vmul.f32 1.442695, %v1403_v27 }
 0x224   :  { %p1902_p6 = pnand %p1901_p5, %p1895_p2 }
 0x225   :  { %1834 = vpow2.f32 %v1422_v47 }
 0x226   :  { %v1827_v46 = vpop.eup %1826  ;;  %1836 = vrcp.f32 %v1424_v54  ;;  %v1848_v54 = vld [vmem:[#allocation3] sm:$0xff] }
 0x227   :  { %v1829_v9 = vpop.eup %1828  ;;  %v1429_v8 = vadd.f32 1.0, %v1827_v46 }
 0x228   :  { %v1430_v56 = vadd.f32 1.0, %v1829_v9  ;;  %v3031_v9 = vld [vmem:[#allocation12_spill] sm:$0xff] }
 0x229   :  { %1838 = vrcp.f32 %v1429_v8 }
 0x22a   :  { %1840 = vrcp.f32 %v1430_v56  ;;  %v1849_v56 = vld [vmem:[#allocation3 + $0x8] sm:$0xff] }
 0x22b   :  { %v1831_v0 = vpop.eup %1830 }
 0x22c   :  { %v1833_v63 = vpop.eup %1832  ;;  %v1431_v39 = vadd.f32 1.0, %v1831_v0 }
 0x22d   :  { %v1432_v42 = vadd.f32 1.0, %v1833_v63  ;;  %v3032_v63 = vld [vmem:[#allocation13_spill] sm:$0xff] }
 0x22e   :  { %1842 = vrcp.f32 %v1431_v39 }
 0x22f   :  { %v1835_v20 = vpop.eup %1834  ;;  %1844 = vrcp.f32 %v1432_v42 }
 0x230   :  { %v1433_v15 = vadd.f32 1.0, %v1835_v20  ;;  %v1837_v17 = vpop.eup %1836 }
 0x231   :  { %v1435_v57 = vmul.f32 %v1837_v17, %v2867_v32  ;;  %v56_v32 = vld [vmem:[%s2963_s5 + $0x20] sm:$0xf] }
 0x232   :  { %1846 = vrcp.f32 %v1433_v15 }
 0x233   :  { %v1839_v24 = vpop.eup %1838 }
 0x234   :  { %v1445_v3 = vmul.f32 %v1839_v24, %v1389_v37  ;;  %v1841_v59 = vpop.eup %1840 }
 0x235   :  { %v1447_v19 = vmul.f32 %v1841_v59, %v1390_v31 }
 0x236   :  { %v1769_v44 = vpack.i.bf16 %v1445_v3, %v1435_v57 }
 0x238   :  { %v1843_v14 = vpop.eup %1842 }
 0x239   :  { %v1449_v49 = vmul.f32 %v1843_v14, %v1391_v6  ;;  %v1845_v5 = vpop.eup %1844 }
 0x23a   :  { %v1451_v60 = vmul.f32 %v1845_v5, %v1392_v40 }
 0x23b   :  { %v1759_v10 = vpack.i.bf16 %v1449_v49, %v1447_v19 }
 0x23c   :  { %v1847_v62 = vpop.eup %1846 }
 0x23d   :  { %v1453_v25 = vmul.f32 %v1847_v62, %v1393_v30  ;;  %1760 = vrot.lane.b32.xlu1 %v1759_v10, %s1942_s19 }
 0x23f   :  { %v1764_v43 = vpack.i.bf16 %v1453_v25, %v1451_v60 }
 0x241   :  { %1765 = vrot.lane.b32.xlu0 %v1764_v43, %s1942_s19  ;;  %1770 = vrot.lane.b32.xlu1 %v1769_v44, %s1942_s19 }
 0x245   :  { %1457 = vperm.xlu0 %1747, %v56_v32  }
 0x26c   :  { %v1751_v38 = vpop.permute.xlu1 %1750 }
 0x26d   :  { %v1753_v33 = vunpack.i.h.bf16 %v1751_v38  ;;  %v1752_v35 = vunpack.i.l.bf16 %v1751_v38 }
 0x26f   :  { %v1491_v12 = vsel %vm1278_vm4, %v1752_v35, %v1753_v33 }
 0x270   :  { %v1756_v55 = vpop.permute.xlu0 %1755 }
 0x271   :  { %v1758_v13 = vunpack.i.h.bf16 %v1756_v55  ;;  %v1757_v37 = vunpack.i.l.bf16 %v1756_v55 }
 0x273   :  { %v1492_v16 = vsel %vm1278_vm4, %v1753_v33, %v1757_v37  ;;  %v1493_v29 = vsel %vm1278_vm4, %v1757_v37, %v1758_v13 }
 0x2af   :  { %v1761_v2 = vpop.permute.xlu1 %1760 }
 0x2b0   :  { %v1763_v34 = vunpack.i.h.bf16 %v1761_v2  ;;  %v1762_v41 = vunpack.i.l.bf16 %v1761_v2 }
 0x2b2   :  { %v1495_v31 = vsel %vm1278_vm4, %v1762_v41, %v1763_v34 }
 0x2b3   :  { %v1766_v21 = vpop.permute.xlu0 %1765  ;;  %v1771_v36 = vpop.permute.xlu1 %1770  ;;  %v1697_v22 = vpack.c.bf16 %v1495_v31, %v1491_v12 }
 0x2b4   :  { %v1768_v26 = vunpack.i.h.bf16 %v1766_v21  ;;  %v1767_v1 = vunpack.i.l.bf16 %v1766_v21  ;;  %v1773_v61 = vunpack.i.h.bf16 %v1771_v36  ;;  %v1772_v18 = vunpack.i.l.bf16 %v1771_v36 }
 0x2b5   :  { %1698 = vmatprep.subr.bf16.mxu0 %v1697_v22 }
 0x2b6   :  { %v1496_v58 = vsel %vm1278_vm4, %v1763_v34, %v1767_v1  ;;  %v1490_v50 = vsel %vm1278_vm4, %v1772_v18, %v1752_v35  ;;  %v1494_v48 = vsel %vm1278_vm4, %v1773_v61, %v1762_v41  ;;  %v1497_v6 = vsel %vm1278_vm4, %v1767_v1, %v1768_v26 }
 0x2b7   :  { %v1703_v40 = vpack.c.bf16 %v1496_v58, %v1492_v16  ;;  %v1699_v7 = vpack.c.bf16 %v1494_v48, %v1490_v50  ;;  %v1701_v11 = vpack.c.bf16 %v1497_v6, %v1493_v29 }
 0x2b9   :  { %1700 = vmatpush1.bf16.msra.mxu0 %v1699_v7  ;;  %1702 = vmatprep.subr.bf16.mxu1 %v1701_v11 }
 0x2ba   :  { %1704 = vmatpush1.bf16.msra.mxu1 %v1703_v40 }
 0x2bc   :  { %1695 = vmatmul.mubr.msk.f32.vlgmr.msra.gmra.mrb[4].mxu0 %vm1154_vm6, %v1454_v28 }
 0x2bd   :  { %1696 = vmatmul.mubr.msk.f32.vlgmr.msra.gmra.mrb[4].mxu1 %vm1154_vm6, %v1454_v28 }
 0x2c4   :  { %v1458_v53 = vpop.permute.xlu0 %1457 }
 0x38f   :  { %v1575_v45 = vpop.f32.mrb[4].mxu0 }
 0x390   :  { %v1576_v4 = vadd.f32 %v1575_v45, %v1458_v53  ;;  %v1577_v23 = vpop.f32.mrb[5].mxu0  ;;  %v1646_v52 = vpop.f32.mrb[4].mxu1 }
 0x391   :  { %v1578_v51 = vadd.f32 %v1577_v23, %v1458_v53  ;;  %v1647_v30 = vadd.f32 %v1646_v52, %v1458_v53  ;;  %v1648_v27 = vpop.f32.mrb[5].mxu1 }
 0x392   :  { %v1653_v47 = vadd.f32 %v1848_v54, %v1576_v4  ;;  %v1649_v46 = vadd.f32 %v1648_v27, %v1458_v53 }
 0x393   :  { %v1654_v8 = vadd.f32 %v1578_v51, %v3031_v9  ;;  %v1655_v0 = vadd.f32 %v1849_v56, %v1647_v30 }
 0x394   :  { %v1656_v39 = vadd.f32 %v1649_v46, %v3032_v63 }
 0x395   :  { %v1661_v42 = vcombine.low %v1653_v47, %v1654_v8 }
 0x396   :  { %v1662_v20 = vcombine.low %v1655_v0, %v1656_v39 }
 0x397   :  { %1665 = vst [vmem:[#allocation8] sm:$0xff] %v1661_v42 }
 0x398   :  { %1666 = vst [vmem:[#allocation8 + $0x8] sm:$0xff] %v1662_v20 }
 0x399   :  { %1905 = shalt.err (!%p1902_p6)
}
 0x39a   :  { %s1906_s16 = scalar_lea.hbm %s2964_s6, 256 }
 0x39b   :  { %p1907_p7 = scmp.ne.s32.totalorder %s2964_s6, %s1906_s16  ;;  %p1910_p8 = scmp.lt.u32.totalorder %s1906_s16, %s2964_s6 }
 0x39d   :  { %p1912_p9 = pnand %p1910_p8, %p1907_p7 }
 0x39f   :  { %1915 = shalt.err (!%p1912_p9)
}
 0x3a0   :  { %1676 = dma.vmem_to_hbm [thread:$0]  %s1674_s12, 256, %s2964_s6, [#allocation5]  }
 0x3a1   :  { %1920 = dma.done.wait [#allocation5], 256  }
 0x3a2   :  { %1921 = vsyncadd [#allocation5], 4294967040 }
 0x3a3   :  { %1680 = vsyncpa [#allocation4], 1 }
 0x3a4   :  { %1681 = vsyncpa [#allocation7], 1 }
 0x3a5   :  { %1682 = vsyncpa [#allocation5], 1 }

</bundles_post_ra>
